<compile_context>
chip_gen: v7x
topology: tpu7x:2x2x1
jax: 0.10.0
libtpu: 0.0.40
codegen_flags: <defaults>
</compile_context>

<pallas_src>
import functools
import math

import jax
import jax.numpy as jnp
from jax import lax
from jax.experimental import pallas as pl
from jax.experimental.pallas import tpu as pltpu  # noqa: F401  (TPU backend)

# ----------------------------- model config (small synthetic BERT) ---------------
VOCAB = 100
TYPE_VOCAB = 2
MAX_POS = 16
HIDDEN = 32          # hidden_size
N_HEADS = 2
HEAD_DIM = HIDDEN // N_HEADS
INTER = 64           # FFN intermediate size
N_LAYERS = 2
OUTPUT_DIM = 4       # Bert_Model(output_dim)
LN_EPS = 1e-12
NEG_BIG = -1e30      # block-diagonal attention mask fill


# ----------------------------- in-kernel helpers ---------------------------------
def _gelu_tanh(x):
    # TODO(synk): HF/PyTorch BERT default is exact erf-GELU; tanh approximation kept
    # for guaranteed Mosaic lowering (EUP tanh). Small (~1e-3) parity deviation.
    c = math.sqrt(2.0 / math.pi)
    return 0.5 * x * (1.0 + jnp.tanh(c * (x + 0.044715 * x * x * x)))


def _layer_norm(x, g, b):
    mu = jnp.mean(x, axis=-1, keepdims=True)
    var = jnp.mean(jnp.square(x - mu), axis=-1, keepdims=True)
    return (x - mu) * lax.rsqrt(var + LN_EPS) * g + b


# ----------------------------- the single fused kernel ---------------------------
def bert_forward_kernel(ids_ref, tok_ref, mask_ref,
                        word_emb_ref, pos_emb_ref, type_emb_ref,
                        emb_g_ref, emb_b_ref,
                        wqkv_ref, bqkv_ref, wo_ref, bo_ref,
                        ln1_g_ref, ln1_b_ref,
                        w1_ref, b1_ref, w2_ref, b2_ref,
                        ln2_g_ref, ln2_b_ref,
                        pool_w_ref, pool_b_ref, out_w_ref, out_b_ref,
                        o_ref,
                        *, batch, seq_len, n_heads, head_dim, n_layers):
    B, S, nH, dH = batch, seq_len, n_heads, head_dim
    H = nH * dH
    rows = B * S
    T = B * nH * S                      # fully (batch, head)-stacked attention rows

    # ---------------- embeddings (in-kernel gathers) + LayerNorm -----------------
    ids = ids_ref[...]                                                   # (rows,1) i32
    onehot_w = (ids == lax.broadcasted_iota(jnp.int32, (rows, VOCAB), 1)
                ).astype(jnp.float32)                                    # (rows,VOCAB)
    x = jnp.dot(onehot_w, word_emb_ref[...], preferred_element_type=jnp.float32)

    # token-type embedding (2 types): pure-VPU blend, no extra tiny matmul
    tok_f = (tok_ref[...] > 0).astype(jnp.float32)                       # (rows,1)
    x = x + tok_f * type_emb_ref[1:2, :] + (1.0 - tok_f) * type_emb_ref[0:1, :]

    # position embedding: rows are (b, s)-major, so tile pos_emb[0:S] over batches
    pos = pos_emb_ref[0:S, :]                                            # (S, H)
    x = x + jnp.concatenate([pos] * B, axis=0)

    x = _layer_norm(x, emb_g_ref[...], emb_b_ref[...])

    # ---------------- attention-mask bias + block-diagonal head mask -------------
    bias = (1.0 - mask_ref[...].astype(jnp.float32)) * -10000.0          # (B, S)
    # column bias ordered like the stacked key rows: [b0h0 | b0h1 | b1h0 | b1h1]
    col_bias = jnp.concatenate(
        [bias[b:b + 1, :] for b in range(B) for _ in range(nH)], axis=1)  # (1, T)

    # block-diagonal mask: a stacked query row only attends to keys of its own (b,h)
    log2_s = int(math.log2(S))
    assert (1 << log2_s) == S, "seq_len must be a power of two for the shift trick"
    rblk = lax.shift_right_logical(
        lax.broadcasted_iota(jnp.int32, (T, T), 0), log2_s)
    cblk = lax.shift_right_logical(
        lax.broadcasted_iota(jnp.int32, (T, T), 1), log2_s)
    same_block = rblk == cblk

    scale = 1.0 / math.sqrt(dH)

    # ---------------- encoder layers (stacked weights, fully unrolled) -----------
    for l in range(n_layers):
        qkv = jnp.dot(x, wqkv_ref[l], preferred_element_type=jnp.float32) + bqkv_ref[l]
        q = qkv[:, 0 * H:1 * H]
        k = qkv[:, 1 * H:2 * H]
        v = qkv[:, 2 * H:3 * H]

        # Stack every (batch, head) tile along rows -> (T, dH): one score matmul and
        # one PV matmul per layer instead of B*nH tiny ones (MXU/MRF latency win).
        def stack(m):
            return jnp.concatenate(
                [m[b * S:(b + 1) * S, h * dH:(h + 1) * dH]
                 for b in range(B) for h in range(nH)], axis=0)

        qs, ks, vs = stack(q), stack(k), stack(v)

        s = lax.dot_general(qs, ks, (((1,), (1,)), ((), ())),
                            preferred_element_type=jnp.float32) * scale   # (T, T)
        s = s + col_bias                                   # key-padding bias (BERT)
        s = jnp.where(same_block, s, NEG_BIG)              # kill cross-(b,h) scores
        s = s - jnp.max(s, axis=-1, keepdims=True)
        p = jnp.exp(s)
        p = p / jnp.sum(p, axis=-1, keepdims=True)         # exact divide (parity)
        c = jnp.dot(p, vs, preferred_element_type=jnp.float32)            # (T, dH)

        # un-stack: heads back to lanes, batches back to rows -> (rows, H), all in vregs
        ctx = jnp.concatenate(
            [jnp.concatenate([c[(b * nH + h) * S:(b * nH + h + 1) * S, :]
                              for h in range(nH)], axis=1)
             for b in range(B)], axis=0)

        attn_out = jnp.dot(ctx, wo_ref[l],
                           preferred_element_type=jnp.float32) + bo_ref[l]
        x1 = _layer_norm(attn_out + x, ln1_g_ref[l], ln1_b_ref[l])

        ff = _gelu_tanh(jnp.dot(x1, w1_ref[l],
                                preferred_element_type=jnp.float32) + b1_ref[l])
        ff = jnp.dot(ff, w2_ref[l], preferred_element_type=jnp.float32) + b2_ref[l]
        x = _layer_norm(ff + x1, ln2_g_ref[l], ln2_b_ref[l])

    # ---------------- CLS rows -> pooler (tanh) -> classification head -----------
    cls = jnp.concatenate([x[b * S:b * S + 1, :] for b in range(B)], axis=0)  # (B, H)
    pooled = jnp.tanh(jnp.dot(cls, pool_w_ref[...],
                              preferred_element_type=jnp.float32) + pool_b_ref[...])
    o_ref[...] = jnp.dot(pooled, out_w_ref[...],
                         preferred_element_type=jnp.float32) + out_b_ref[...]


# ----------------------------- wrapper (one grid-less pallas_call) ---------------
def bert_model_forward(params, seq, attention_mask, token_type):
    """Mirrors Bert_Model.forward: pooled BERT output -> Linear(output_dim)."""
    B, S = seq.shape
    kernel = functools.partial(bert_forward_kernel, batch=B, seq_len=S,
                               n_heads=N_HEADS, head_dim=HEAD_DIM, n_layers=N_LAYERS)
    # Only remaining glue: flatten id tensors to (B*S, 1) for the in-kernel one-hot.
    ids = seq.reshape(B * S, 1).astype(jnp.int32)
    tok = token_type.reshape(B * S, 1).astype(jnp.int32)
    return pl.pallas_call(
        kernel,
        out_shape=jax.ShapeDtypeStruct((B, OUTPUT_DIM), jnp.float32),
    )(ids, tok, attention_mask.astype(jnp.int32),
      params["word_emb"], params["pos_emb"], params["type_emb"],
      params["emb_ln_g"], params["emb_ln_b"],
      params["wqkv"], params["bqkv"], params["wo"], params["bo"],
      params["ln1_g"], params["ln1_b"],
      params["w1"], params["b1"], params["w2"], params["b2"],
      params["ln2_g"], params["ln2_b"],
      params["pool_w"], params["pool_b"], params["out_w"], params["out_b"])


# ----------------------------- parameter construction ----------------------------
def init_params(key):
    std = 0.02
    keys = iter(jax.random.split(key, 64))

    def nrm(shape):
        return (std * jax.random.normal(next(keys), shape)).astype(jnp.float32)

    L = N_LAYERS
    return {
        "word_emb": nrm((VOCAB, HIDDEN)),
        "pos_emb": nrm((MAX_POS, HIDDEN)),
        "type_emb": nrm((TYPE_VOCAB, HIDDEN)),
        "emb_ln_g": jnp.ones((1, HIDDEN), jnp.float32),
        "emb_ln_b": jnp.zeros((1, HIDDEN), jnp.float32),
        # per-layer weights stacked on a leading L axis (one DMA per tensor, not per layer)
        "wqkv": nrm((L, HIDDEN, 3 * HIDDEN)),
        "bqkv": jnp.zeros((L, 1, 3 * HIDDEN), jnp.float32),
        "wo": nrm((L, HIDDEN, HIDDEN)),
        "bo": jnp.zeros((L, 1, HIDDEN), jnp.float32),
        "ln1_g": jnp.ones((L, 1, HIDDEN), jnp.float32),
        "ln1_b": jnp.zeros((L, 1, HIDDEN), jnp.float32),
        "w1": nrm((L, HIDDEN, INTER)),
        "b1": jnp.zeros((L, 1, INTER), jnp.float32),
        "w2": nrm((L, INTER, HIDDEN)),
        "b2": jnp.zeros((L, 1, HIDDEN), jnp.float32),
        "ln2_g": jnp.ones((L, 1, HIDDEN), jnp.float32),
        "ln2_b": jnp.zeros((L, 1, HIDDEN), jnp.float32),
        "pool_w": nrm((HIDDEN, HIDDEN)),
        "pool_b": jnp.zeros((1, HIDDEN), jnp.float32),
        "out_w": nrm((HIDDEN, OUTPUT_DIM)),
        "out_b": jnp.zeros((1, OUTPUT_DIM), jnp.float32),
    }


# ----------------------------- main -----------------------------------------------
if __name__ == "__main__":
    key = jax.random.PRNGKey(0)
    pkey, dkey = jax.random.split(key)
    params = init_params(pkey)

    B, S = 2, 8
    seq = jax.random.randint(dkey, (B, S), 0, VOCAB, dtype=jnp.int32)
    attention_mask = jnp.array(
        [[1, 1, 1, 1, 1, 1, 1, 1],
         [1, 1, 1, 1, 1, 0, 0, 0]], dtype=jnp.int32)
    token_type = jnp.array(
        [[0, 0, 0, 0, 1, 1, 1, 1],
         [0, 0, 0, 1, 1, 1, 1, 1]], dtype=jnp.int32)

    out = jax.jit(bert_model_forward)(params, seq, attention_mask, token_type)
    out = jax.block_until_ready(out)
    assert out.shape == (B, OUTPUT_DIM), out.shape
    assert out.dtype == jnp.float32
    print("KERNEL_OK")
</pallas_src>

<mosaic_0001>
module attributes {stable_mosaic.version = 11 : i64} {
  func.func @bert_forward_kernel(%arg0: memref<16x1xi32, #tpu.memory_space<vmem>>, %arg1: memref<16x1xi32, #tpu.memory_space<vmem>>, %arg2: memref<2x8xi32, #tpu.memory_space<vmem>>, %arg3: memref<100x32xf32, #tpu.memory_space<vmem>>, %arg4: memref<16x32xf32, #tpu.memory_space<vmem>>, %arg5: memref<2x32xf32, #tpu.memory_space<vmem>>, %arg6: memref<1x32xf32, #tpu.memory_space<vmem>>, %arg7: memref<1x32xf32, #tpu.memory_space<vmem>>, %arg8: memref<2x32x96xf32, #tpu.memory_space<vmem>>, %arg9: memref<2x1x96xf32, #tpu.memory_space<vmem>>, %arg10: memref<2x32x32xf32, #tpu.memory_space<vmem>>, %arg11: memref<2x1x32xf32, #tpu.memory_space<vmem>>, %arg12: memref<2x1x32xf32, #tpu.memory_space<vmem>>, %arg13: memref<2x1x32xf32, #tpu.memory_space<vmem>>, %arg14: memref<2x32x64xf32, #tpu.memory_space<vmem>>, %arg15: memref<2x1x64xf32, #tpu.memory_space<vmem>>, %arg16: memref<2x64x32xf32, #tpu.memory_space<vmem>>, %arg17: memref<2x1x32xf32, #tpu.memory_space<vmem>>, %arg18: memref<2x1x32xf32, #tpu.memory_space<vmem>>, %arg19: memref<2x1x32xf32, #tpu.memory_space<vmem>>, %arg20: memref<32x32xf32, #tpu.memory_space<vmem>>, %arg21: memref<1x32xf32, #tpu.memory_space<vmem>>, %arg22: memref<32x4xf32, #tpu.memory_space<vmem>>, %arg23: memref<1x4xf32, #tpu.memory_space<vmem>>, %arg24: memref<2x4xf32, #tpu.memory_space<vmem>>) attributes {dimension_semantics = [], scalar_prefetch = 0 : i64, scratch_operands = 0 : i64, tpu.core_type = #tpu.core_type<tc>} {
    %c0 = arith.constant 0 : index
    %c0_0 = arith.constant 0 : index
    %0 = vector.load %arg0[%c0, %c0_0] : memref<16x1xi32, #tpu.memory_space<vmem>>, vector<16x1xi32>
    %1 = tpu.iota {dimensions = array<i32: 1>} : vector<16x100xi32>
    %2 = vector.broadcast %0 : vector<16x1xi32> to vector<16x100xi32>
    %3 = arith.cmpi eq, %2, %1 : vector<16x100xi32>
    %4 = arith.extui %3 : vector<16x100xi1> to vector<16x100xi32>
    %5 = arith.sitofp %4 : vector<16x100xi32> to vector<16x100xf32>
    %c0_1 = arith.constant 0 : index
    %c0_2 = arith.constant 0 : index
    %6 = vector.load %arg3[%c0_1, %c0_2] : memref<100x32xf32, #tpu.memory_space<vmem>>, vector<100x32xf32>
    %cst = arith.constant dense<0.000000e+00> : vector<16x32xf32>
    %7 = tpu.matmul %5, %6, %cst {dimension_numbers = #tpu.dot_dimension_numbers<[1], [0], [0], [1], [0, 0, 1, 1], [], []>} : vector<16x100xf32>, vector<100x32xf32>, vector<16x32xf32> -> vector<16x32xf32>
    %c0_3 = arith.constant 0 : index
    %c0_4 = arith.constant 0 : index
    %8 = vector.load %arg1[%c0_3, %c0_4] : memref<16x1xi32, #tpu.memory_space<vmem>>, vector<16x1xi32>
    %c0_i32 = arith.constant 0 : i32
    %9 = vector.broadcast %c0_i32 : i32 to vector<16x1xi32>
    %10 = arith.cmpi sgt, %8, %9 : vector<16x1xi32>
    %11 = arith.extui %10 : vector<16x1xi1> to vector<16x1xi32>
    %12 = arith.sitofp %11 : vector<16x1xi32> to vector<16x1xf32>
    %c1 = arith.constant 1 : index
    %c0_5 = arith.constant 0 : index
    %13 = vector.load %arg5[%c1, %c0_5] : memref<2x32xf32, #tpu.memory_space<vmem>>, vector<1x32xf32>
    %14 = vector.broadcast %12 : vector<16x1xf32> to vector<16x32xf32>
    %15 = vector.broadcast %13 : vector<1x32xf32> to vector<16x32xf32>
    %16 = arith.mulf %14, %15 : vector<16x32xf32>
    %17 = arith.addf %7, %16 : vector<16x32xf32>
    %cst_6 = arith.constant 1.000000e+00 : f32
    %18 = vector.broadcast %cst_6 : f32 to vector<16x1xf32>
    %19 = arith.subf %18, %12 : vector<16x1xf32>
    %c0_7 = arith.constant 0 : index
    %c0_8 = arith.constant 0 : index
    %20 = vector.load %arg5[%c0_7, %c0_8] : memref<2x32xf32, #tpu.memory_space<vmem>>, vector<1x32xf32>
    %21 = vector.broadcast %19 : vector<16x1xf32> to vector<16x32xf32>
    %22 = vector.broadcast %20 : vector<1x32xf32> to vector<16x32xf32>
    %23 = arith.mulf %21, %22 : vector<16x32xf32>
    %24 = arith.addf %17, %23 : vector<16x32xf32>
    %c0_9 = arith.constant 0 : index
    %c0_10 = arith.constant 0 : index
    %25 = vector.load %arg4[%c0_9, %c0_10] : memref<16x32xf32, #tpu.memory_space<vmem>>, vector<8x32xf32>
    %26 = tpu.concatenate %25, %25 in 0 : vector<8x32xf32>, vector<8x32xf32> -> vector<16x32xf32>
    %27 = arith.addf %24, %26 : vector<16x32xf32>
    %c0_11 = arith.constant 0 : index
    %c0_12 = arith.constant 0 : index
    %28 = vector.load %arg6[%c0_11, %c0_12] : memref<1x32xf32, #tpu.memory_space<vmem>>, vector<1x32xf32>
    %c0_13 = arith.constant 0 : index
    %c0_14 = arith.constant 0 : index
    %29 = vector.load %arg7[%c0_13, %c0_14] : memref<1x32xf32, #tpu.memory_space<vmem>>, vector<1x32xf32>
    %cst_15 = arith.constant dense<0.000000e+00> : vector<16xf32>
    %30 = vector.multi_reduction <add>, %27, %cst_15 [1] : vector<16x32xf32> to vector<16xf32>
    %31 = vector.shape_cast %30 : vector<16xf32> to vector<16x1xf32>
    %cst_16 = arith.constant 3.200000e+01 : f32
    %32 = vector.broadcast %cst_16 : f32 to vector<16x1xf32>
    %33 = arith.divf %31, %32 : vector<16x1xf32>
    %34 = vector.broadcast %33 : vector<16x1xf32> to vector<16x32xf32>
    %35 = arith.subf %27, %34 : vector<16x32xf32>
    %36 = arith.mulf %35, %35 : vector<16x32xf32>
    %cst_17 = arith.constant dense<0.000000e+00> : vector<16xf32>
    %37 = vector.multi_reduction <add>, %36, %cst_17 [1] : vector<16x32xf32> to vector<16xf32>
    %38 = vector.shape_cast %37 : vector<16xf32> to vector<16x1xf32>
    %cst_18 = arith.constant 3.200000e+01 : f32
    %39 = vector.broadcast %cst_18 : f32 to vector<16x1xf32>
    %40 = arith.divf %38, %39 : vector<16x1xf32>
    %41 = vector.broadcast %33 : vector<16x1xf32> to vector<16x32xf32>
    %42 = arith.subf %27, %41 : vector<16x32xf32>
    %cst_19 = arith.constant 9.99999996E-13 : f32
    %43 = vector.broadcast %cst_19 : f32 to vector<16x1xf32>
    %44 = arith.addf %40, %43 : vector<16x1xf32>
    %45 = math.rsqrt %44 : vector<16x1xf32>
    %46 = vector.broadcast %45 : vector<16x1xf32> to vector<16x32xf32>
    %47 = arith.mulf %42, %46 : vector<16x32xf32>
    %48 = vector.broadcast %28 : vector<1x32xf32> to vector<16x32xf32>
    %49 = arith.mulf %47, %48 : vector<16x32xf32>
    %50 = vector.broadcast %29 : vector<1x32xf32> to vector<16x32xf32>
    %51 = arith.addf %49, %50 : vector<16x32xf32>
    %c0_20 = arith.constant 0 : index
    %c0_21 = arith.constant 0 : index
    %52 = vector.load %arg2[%c0_20, %c0_21] : memref<2x8xi32, #tpu.memory_space<vmem>>, vector<2x8xi32>
    %53 = arith.sitofp %52 : vector<2x8xi32> to vector<2x8xf32>
    %cst_22 = arith.constant 1.000000e+00 : f32
    %54 = vector.broadcast %cst_22 : f32 to vector<2x8xf32>
    %55 = arith.subf %54, %53 : vector<2x8xf32>
    %cst_23 = arith.constant -1.000000e+04 : f32
    %56 = vector.broadcast %cst_23 : f32 to vector<2x8xf32>
    %57 = arith.mulf %55, %56 : vector<2x8xf32>
    %58 = vector.extract_strided_slice %57 {offsets = [0, 0], sizes = [1, 8], strides = [1, 1]} : vector<2x8xf32> to vector<1x8xf32>
    %59 = vector.extract_strided_slice %57 {offsets = [0, 0], sizes = [1, 8], strides = [1, 1]} : vector<2x8xf32> to vector<1x8xf32>
    %60 = vector.extract_strided_slice %57 {offsets = [1, 0], sizes = [1, 8], strides = [1, 1]} : vector<2x8xf32> to vector<1x8xf32>
    %61 = vector.extract_strided_slice %57 {offsets = [1, 0], sizes = [1, 8], strides = [1, 1]} : vector<2x8xf32> to vector<1x8xf32>
    %62 = tpu.concatenate %58, %59, %60, %61 in 1 : vector<1x8xf32>, vector<1x8xf32>, vector<1x8xf32>, vector<1x8xf32> -> vector<1x32xf32>
    %63 = tpu.iota {dimensions = array<i32: 0>} : vector<32x32xi32>
    %c3_i32 = arith.constant 3 : i32
    %64 = vector.broadcast %c3_i32 : i32 to vector<32x32xi32>
    %65 = arith.shrui %63, %64 : vector<32x32xi32>
    %66 = tpu.iota {dimensions = array<i32: 1>} : vector<32x32xi32>
    %c3_i32_24 = arith.constant 3 : i32
    %67 = vector.broadcast %c3_i32_24 : i32 to vector<32x32xi32>
    %68 = arith.shrui %66, %67 : vector<32x32xi32>
    %69 = arith.cmpi eq, %65, %68 : vector<32x32xi32>
    %c0_25 = arith.constant 0 : index
    %c0_26 = arith.constant 0 : index
    %c0_27 = arith.constant 0 : index
    %70 = vector.load %arg8[%c0_25, %c0_26, %c0_27] : memref<2x32x96xf32, #tpu.memory_space<vmem>>, vector<1x32x96xf32>
    %71 = vector.shape_cast %70 : vector<1x32x96xf32> to vector<32x96xf32>
    %cst_28 = arith.constant dense<0.000000e+00> : vector<16x96xf32>
    %72 = tpu.matmul %51, %71, %cst_28 {dimension_numbers = #tpu.dot_dimension_numbers<[1], [0], [0], [1], [0, 0, 1, 1], [], []>} : vector<16x32xf32>, vector<32x96xf32>, vector<16x96xf32> -> vector<16x96xf32>
    %c0_29 = arith.constant 0 : index
    %c0_30 = arith.constant 0 : index
    %c0_31 = arith.constant 0 : index
    %73 = vector.load %arg9[%c0_29, %c0_30, %c0_31] : memref<2x1x96xf32, #tpu.memory_space<vmem>>, vector<1x1x96xf32>
    %74 = vector.shape_cast %73 : vector<1x1x96xf32> to vector<1x96xf32>
    %75 = vector.broadcast %74 : vector<1x96xf32> to vector<16x96xf32>
    %76 = arith.addf %72, %75 : vector<16x96xf32>
    %77 = vector.extract_strided_slice %76 {offsets = [0, 0], sizes = [16, 32], strides = [1, 1]} : vector<16x96xf32> to vector<16x32xf32>
    %78 = vector.extract_strided_slice %76 {offsets = [0, 32], sizes = [16, 32], strides = [1, 1]} : vector<16x96xf32> to vector<16x32xf32>
    %79 = vector.extract_strided_slice %76 {offsets = [0, 64], sizes = [16, 32], strides = [1, 1]} : vector<16x96xf32> to vector<16x32xf32>
    %80 = vector.extract_strided_slice %77 {offsets = [0, 0], sizes = [8, 16], strides = [1, 1]} : vector<16x32xf32> to vector<8x16xf32>
    %81 = vector.extract_strided_slice %77 {offsets = [0, 16], sizes = [8, 16], strides = [1, 1]} : vector<16x32xf32> to vector<8x16xf32>
    %82 = vector.extract_strided_slice %77 {offsets = [8, 0], sizes = [8, 16], strides = [1, 1]} : vector<16x32xf32> to vector<8x16xf32>
    %83 = vector.extract_strided_slice %77 {offsets = [8, 16], sizes = [8, 16], strides = [1, 1]} : vector<16x32xf32> to vector<8x16xf32>
    %84 = tpu.concatenate %80, %81, %82, %83 in 0 : vector<8x16xf32>, vector<8x16xf32>, vector<8x16xf32>, vector<8x16xf32> -> vector<32x16xf32>
    %85 = vector.extract_strided_slice %78 {offsets = [0, 0], sizes = [8, 16], strides = [1, 1]} : vector<16x32xf32> to vector<8x16xf32>
    %86 = vector.extract_strided_slice %78 {offsets = [0, 16], sizes = [8, 16], strides = [1, 1]} : vector<16x32xf32> to vector<8x16xf32>
    %87 = vector.extract_strided_slice %78 {offsets = [8, 0], sizes = [8, 16], strides = [1, 1]} : vector<16x32xf32> to vector<8x16xf32>
    %88 = vector.extract_strided_slice %78 {offsets = [8, 16], sizes = [8, 16], strides = [1, 1]} : vector<16x32xf32> to vector<8x16xf32>
    %89 = tpu.concatenate %85, %86, %87, %88 in 0 : vector<8x16xf32>, vector<8x16xf32>, vector<8x16xf32>, vector<8x16xf32> -> vector<32x16xf32>
    %90 = vector.extract_strided_slice %79 {offsets = [0, 0], sizes = [8, 16], strides = [1, 1]} : vector<16x32xf32> to vector<8x16xf32>
    %91 = vector.extract_strided_slice %79 {offsets = [0, 16], sizes = [8, 16], strides = [1, 1]} : vector<16x32xf32> to vector<8x16xf32>
    %92 = vector.extract_strided_slice %79 {offsets = [8, 0], sizes = [8, 16], strides = [1, 1]} : vector<16x32xf32> to vector<8x16xf32>
    %93 = vector.extract_strided_slice %79 {offsets = [8, 16], sizes = [8, 16], strides = [1, 1]} : vector<16x32xf32> to vector<8x16xf32>
    %94 = tpu.concatenate %90, %91, %92, %93 in 0 : vector<8x16xf32>, vector<8x16xf32>, vector<8x16xf32>, vector<8x16xf32> -> vector<32x16xf32>
    %cst_32 = arith.constant dense<0.000000e+00> : vector<32x32xf32>
    %95 = tpu.matmul %84, %89, %cst_32 {dimension_numbers = #tpu.dot_dimension_numbers<[1], [1], [0], [0], [0, 0, 1, 0], [], []>} : vector<32x16xf32>, vector<32x16xf32>, vector<32x32xf32> -> vector<32x32xf32>
    %cst_33 = arith.constant 2.500000e-01 : f32
    %96 = vector.broadcast %cst_33 : f32 to vector<32x32xf32>
    %97 = arith.mulf %95, %96 : vector<32x32xf32>
    %98 = vector.broadcast %62 : vector<1x32xf32> to vector<32x32xf32>
    %99 = arith.addf %97, %98 : vector<32x32xf32>
    %cst_34 = arith.constant -1.000000e+30 : f32
    %100 = vector.broadcast %cst_34 : f32 to vector<32x32xf32>
    %101 = arith.select %69, %99, %100 : vector<32x32xi1>, vector<32x32xf32>
    %cst_35 = arith.constant dense<0xFF800000> : vector<32xf32>
    %102 = vector.multi_reduction <maximumf>, %101, %cst_35 [1] : vector<32x32xf32> to vector<32xf32>
    %103 = vector.shape_cast %102 : vector<32xf32> to vector<32x1xf32>
    %104 = vector.broadcast %103 : vector<32x1xf32> to vector<32x32xf32>
    %105 = arith.subf %101, %104 : vector<32x32xf32>
    %106 = math.exp %105 : vector<32x32xf32>
    %cst_36 = arith.constant dense<0.000000e+00> : vector<32xf32>
    %107 = vector.multi_reduction <add>, %106, %cst_36 [1] : vector<32x32xf32> to vector<32xf32>
    %108 = vector.shape_cast %107 : vector<32xf32> to vector<32x1xf32>
    %109 = vector.broadcast %108 : vector<32x1xf32> to vector<32x32xf32>
    %110 = arith.divf %106, %109 : vector<32x32xf32>
    %cst_37 = arith.constant dense<0.000000e+00> : vector<32x16xf32>
    %111 = tpu.matmul %110, %94, %cst_37 {dimension_numbers = #tpu.dot_dimension_numbers<[1], [0], [0], [1], [0, 0, 1, 1], [], []>} : vector<32x32xf32>, vector<32x16xf32>, vector<32x16xf32> -> vector<32x16xf32>
    %112 = vector.extract_strided_slice %111 {offsets = [0, 0], sizes = [8, 16], strides = [1, 1]} : vector<32x16xf32> to vector<8x16xf32>
    %113 = vector.extract_strided_slice %111 {offsets = [8, 0], sizes = [8, 16], strides = [1, 1]} : vector<32x16xf32> to vector<8x16xf32>
    %114 = tpu.concatenate %112, %113 in 1 : vector<8x16xf32>, vector<8x16xf32> -> vector<8x32xf32>
    %115 = vector.extract_strided_slice %111 {offsets = [16, 0], sizes = [8, 16], strides = [1, 1]} : vector<32x16xf32> to vector<8x16xf32>
    %116 = vector.extract_strided_slice %111 {offsets = [24, 0], sizes = [8, 16], strides = [1, 1]} : vector<32x16xf32> to vector<8x16xf32>
    %117 = tpu.concatenate %115, %116 in 1 : vector<8x16xf32>, vector<8x16xf32> -> vector<8x32xf32>
    %118 = tpu.concatenate %114, %117 in 0 : vector<8x32xf32>, vector<8x32xf32> -> vector<16x32xf32>
    %c0_38 = arith.constant 0 : index
    %c0_39 = arith.constant 0 : index
    %c0_40 = arith.constant 0 : index
    %119 = vector.load %arg10[%c0_38, %c0_39, %c0_40] : memref<2x32x32xf32, #tpu.memory_space<vmem>>, vector<1x32x32xf32>
    %120 = vector.shape_cast %119 : vector<1x32x32xf32> to vector<32x32xf32>
    %cst_41 = arith.constant dense<0.000000e+00> : vector<16x32xf32>
    %121 = tpu.matmul %118, %120, %cst_41 {dimension_numbers = #tpu.dot_dimension_numbers<[1], [0], [0], [1], [0, 0, 1, 1], [], []>} : vector<16x32xf32>, vector<32x32xf32>, vector<16x32xf32> -> vector<16x32xf32>
    %c0_42 = arith.constant 0 : index
    %c0_43 = arith.constant 0 : index
    %c0_44 = arith.constant 0 : index
    %122 = vector.load %arg11[%c0_42, %c0_43, %c0_44] : memref<2x1x32xf32, #tpu.memory_space<vmem>>, vector<1x1x32xf32>
    %123 = vector.shape_cast %122 : vector<1x1x32xf32> to vector<1x32xf32>
    %124 = vector.broadcast %123 : vector<1x32xf32> to vector<16x32xf32>
    %125 = arith.addf %121, %124 : vector<16x32xf32>
    %126 = arith.addf %125, %51 : vector<16x32xf32>
    %c0_45 = arith.constant 0 : index
    %c0_46 = arith.constant 0 : index
    %c0_47 = arith.constant 0 : index
    %127 = vector.load %arg12[%c0_45, %c0_46, %c0_47] : memref<2x1x32xf32, #tpu.memory_space<vmem>>, vector<1x1x32xf32>
    %128 = vector.shape_cast %127 : vector<1x1x32xf32> to vector<1x32xf32>
    %c0_48 = arith.constant 0 : index
    %c0_49 = arith.constant 0 : index
    %c0_50 = arith.constant 0 : index
    %129 = vector.load %arg13[%c0_48, %c0_49, %c0_50] : memref<2x1x32xf32, #tpu.memory_space<vmem>>, vector<1x1x32xf32>
    %130 = vector.shape_cast %129 : vector<1x1x32xf32> to vector<1x32xf32>
    %cst_51 = arith.constant dense<0.000000e+00> : vector<16xf32>
    %131 = vector.multi_reduction <add>, %126, %cst_51 [1] : vector<16x32xf32> to vector<16xf32>
    %132 = vector.shape_cast %131 : vector<16xf32> to vector<16x1xf32>
    %cst_52 = arith.constant 3.200000e+01 : f32
    %133 = vector.broadcast %cst_52 : f32 to vector<16x1xf32>
    %134 = arith.divf %132, %133 : vector<16x1xf32>
    %135 = vector.broadcast %134 : vector<16x1xf32> to vector<16x32xf32>
    %136 = arith.subf %126, %135 : vector<16x32xf32>
    %137 = arith.mulf %136, %136 : vector<16x32xf32>
    %cst_53 = arith.constant dense<0.000000e+00> : vector<16xf32>
    %138 = vector.multi_reduction <add>, %137, %cst_53 [1] : vector<16x32xf32> to vector<16xf32>
    %139 = vector.shape_cast %138 : vector<16xf32> to vector<16x1xf32>
    %cst_54 = arith.constant 3.200000e+01 : f32
    %140 = vector.broadcast %cst_54 : f32 to vector<16x1xf32>
    %141 = arith.divf %139, %140 : vector<16x1xf32>
    %142 = vector.broadcast %134 : vector<16x1xf32> to vector<16x32xf32>
    %143 = arith.subf %126, %142 : vector<16x32xf32>
    %cst_55 = arith.constant 9.99999996E-13 : f32
    %144 = vector.broadcast %cst_55 : f32 to vector<16x1xf32>
    %145 = arith.addf %141, %144 : vector<16x1xf32>
    %146 = math.rsqrt %145 : vector<16x1xf32>
    %147 = vector.broadcast %146 : vector<16x1xf32> to vector<16x32xf32>
    %148 = arith.mulf %143, %147 : vector<16x32xf32>
    %149 = vector.broadcast %128 : vector<1x32xf32> to vector<16x32xf32>
    %150 = arith.mulf %148, %149 : vector<16x32xf32>
    %151 = vector.broadcast %130 : vector<1x32xf32> to vector<16x32xf32>
    %152 = arith.addf %150, %151 : vector<16x32xf32>
    %c0_56 = arith.constant 0 : index
    %c0_57 = arith.constant 0 : index
    %c0_58 = arith.constant 0 : index
    %153 = vector.load %arg14[%c0_56, %c0_57, %c0_58] : memref<2x32x64xf32, #tpu.memory_space<vmem>>, vector<1x32x64xf32>
    %154 = vector.shape_cast %153 : vector<1x32x64xf32> to vector<32x64xf32>
    %cst_59 = arith.constant dense<0.000000e+00> : vector<16x64xf32>
    %155 = tpu.matmul %152, %154, %cst_59 {dimension_numbers = #tpu.dot_dimension_numbers<[1], [0], [0], [1], [0, 0, 1, 1], [], []>} : vector<16x32xf32>, vector<32x64xf32>, vector<16x64xf32> -> vector<16x64xf32>
    %c0_60 = arith.constant 0 : index
    %c0_61 = arith.constant 0 : index
    %c0_62 = arith.constant 0 : index
    %156 = vector.load %arg15[%c0_60, %c0_61, %c0_62] : memref<2x1x64xf32, #tpu.memory_space<vmem>>, vector<1x1x64xf32>
    %157 = vector.shape_cast %156 : vector<1x1x64xf32> to vector<1x64xf32>
    %158 = vector.broadcast %157 : vector<1x64xf32> to vector<16x64xf32>
    %159 = arith.addf %155, %158 : vector<16x64xf32>
    %cst_63 = arith.constant 5.000000e-01 : f32
    %160 = vector.broadcast %cst_63 : f32 to vector<16x64xf32>
    %161 = arith.mulf %160, %159 : vector<16x64xf32>
    %cst_64 = arith.constant 4.471500e-02 : f32
    %162 = vector.broadcast %cst_64 : f32 to vector<16x64xf32>
    %163 = arith.mulf %162, %159 : vector<16x64xf32>
    %164 = arith.mulf %163, %159 : vector<16x64xf32>
    %165 = arith.mulf %164, %159 : vector<16x64xf32>
    %166 = arith.addf %159, %165 : vector<16x64xf32>
    %cst_65 = arith.constant 0.797884583 : f32
    %167 = vector.broadcast %cst_65 : f32 to vector<16x64xf32>
    %168 = arith.mulf %167, %166 : vector<16x64xf32>
    %169 = math.tanh %168 : vector<16x64xf32>
    %cst_66 = arith.constant 1.000000e+00 : f32
    %170 = vector.broadcast %cst_66 : f32 to vector<16x64xf32>
    %171 = arith.addf %170, %169 : vector<16x64xf32>
    %172 = arith.mulf %161, %171 : vector<16x64xf32>
    %c0_67 = arith.constant 0 : index
    %c0_68 = arith.constant 0 : index
    %c0_69 = arith.constant 0 : index
    %173 = vector.load %arg16[%c0_67, %c0_68, %c0_69] : memref<2x64x32xf32, #tpu.memory_space<vmem>>, vector<1x64x32xf32>
    %174 = vector.shape_cast %173 : vector<1x64x32xf32> to vector<64x32xf32>
    %cst_70 = arith.constant dense<0.000000e+00> : vector<16x32xf32>
    %175 = tpu.matmul %172, %174, %cst_70 {dimension_numbers = #tpu.dot_dimension_numbers<[1], [0], [0], [1], [0, 0, 1, 1], [], []>} : vector<16x64xf32>, vector<64x32xf32>, vector<16x32xf32> -> vector<16x32xf32>
    %c0_71 = arith.constant 0 : index
    %c0_72 = arith.constant 0 : index
    %c0_73 = arith.constant 0 : index
    %176 = vector.load %arg17[%c0_71, %c0_72, %c0_73] : memref<2x1x32xf32, #tpu.memory_space<vmem>>, vector<1x1x32xf32>
    %177 = vector.shape_cast %176 : vector<1x1x32xf32> to vector<1x32xf32>
    %178 = vector.broadcast %177 : vector<1x32xf32> to vector<16x32xf32>
    %179 = arith.addf %175, %178 : vector<16x32xf32>
    %180 = arith.addf %179, %152 : vector<16x32xf32>
    %c0_74 = arith.constant 0 : index
    %c0_75 = arith.constant 0 : index
    %c0_76 = arith.constant 0 : index
    %181 = vector.load %arg18[%c0_74, %c0_75, %c0_76] : memref<2x1x32xf32, #tpu.memory_space<vmem>>, vector<1x1x32xf32>
    %182 = vector.shape_cast %181 : vector<1x1x32xf32> to vector<1x32xf32>
    %c0_77 = arith.constant 0 : index
    %c0_78 = arith.constant 0 : index
    %c0_79 = arith.constant 0 : index
    %183 = vector.load %arg19[%c0_77, %c0_78, %c0_79] : memref<2x1x32xf32, #tpu.memory_space<vmem>>, vector<1x1x32xf32>
    %184 = vector.shape_cast %183 : vector<1x1x32xf32> to vector<1x32xf32>
    %cst_80 = arith.constant dense<0.000000e+00> : vector<16xf32>
    %185 = vector.multi_reduction <add>, %180, %cst_80 [1] : vector<16x32xf32> to vector<16xf32>
    %186 = vector.shape_cast %185 : vector<16xf32> to vector<16x1xf32>
    %cst_81 = arith.constant 3.200000e+01 : f32
    %187 = vector.broadcast %cst_81 : f32 to vector<16x1xf32>
    %188 = arith.divf %186, %187 : vector<16x1xf32>
    %189 = vector.broadcast %188 : vector<16x1xf32> to vector<16x32xf32>
    %190 = arith.subf %180, %189 : vector<16x32xf32>
    %191 = arith.mulf %190, %190 : vector<16x32xf32>
    %cst_82 = arith.constant dense<0.000000e+00> : vector<16xf32>
    %192 = vector.multi_reduction <add>, %191, %cst_82 [1] : vector<16x32xf32> to vector<16xf32>
    %193 = vector.shape_cast %192 : vector<16xf32> to vector<16x1xf32>
    %cst_83 = arith.constant 3.200000e+01 : f32
    %194 = vector.broadcast %cst_83 : f32 to vector<16x1xf32>
    %195 = arith.divf %193, %194 : vector<16x1xf32>
    %196 = vector.broadcast %188 : vector<16x1xf32> to vector<16x32xf32>
    %197 = arith.subf %180, %196 : vector<16x32xf32>
    %cst_84 = arith.constant 9.99999996E-13 : f32
    %198 = vector.broadcast %cst_84 : f32 to vector<16x1xf32>
    %199 = arith.addf %195, %198 : vector<16x1xf32>
    %200 = math.rsqrt %199 : vector<16x1xf32>
    %201 = vector.broadcast %200 : vector<16x1xf32> to vector<16x32xf32>
    %202 = arith.mulf %197, %201 : vector<16x32xf32>
    %203 = vector.broadcast %182 : vector<1x32xf32> to vector<16x32xf32>
    %204 = arith.mulf %202, %203 : vector<16x32xf32>
    %205 = vector.broadcast %184 : vector<1x32xf32> to vector<16x32xf32>
    %206 = arith.addf %204, %205 : vector<16x32xf32>
    %c1_85 = arith.constant 1 : index
    %c0_86 = arith.constant 0 : index
    %c0_87 = arith.constant 0 : index
    %207 = vector.load %arg8[%c1_85, %c0_86, %c0_87] : memref<2x32x96xf32, #tpu.memory_space<vmem>>, vector<1x32x96xf32>
    %208 = vector.shape_cast %207 : vector<1x32x96xf32> to vector<32x96xf32>
    %cst_88 = arith.constant dense<0.000000e+00> : vector<16x96xf32>
    %209 = tpu.matmul %206, %208, %cst_88 {dimension_numbers = #tpu.dot_dimension_numbers<[1], [0], [0], [1], [0, 0, 1, 1], [], []>} : vector<16x32xf32>, vector<32x96xf32>, vector<16x96xf32> -> vector<16x96xf32>
    %c1_89 = arith.constant 1 : index
    %c0_90 = arith.constant 0 : index
    %c0_91 = arith.constant 0 : index
    %210 = vector.load %arg9[%c1_89, %c0_90, %c0_91] : memref<2x1x96xf32, #tpu.memory_space<vmem>>, vector<1x1x96xf32>
    %211 = vector.shape_cast %210 : vector<1x1x96xf32> to vector<1x96xf32>
    %212 = vector.broadcast %211 : vector<1x96xf32> to vector<16x96xf32>
    %213 = arith.addf %209, %212 : vector<16x96xf32>
    %214 = vector.extract_strided_slice %213 {offsets = [0, 0], sizes = [16, 32], strides = [1, 1]} : vector<16x96xf32> to vector<16x32xf32>
    %215 = vector.extract_strided_slice %213 {offsets = [0, 32], sizes = [16, 32], strides = [1, 1]} : vector<16x96xf32> to vector<16x32xf32>
    %216 = vector.extract_strided_slice %213 {offsets = [0, 64], sizes = [16, 32], strides = [1, 1]} : vector<16x96xf32> to vector<16x32xf32>
    %217 = vector.extract_strided_slice %214 {offsets = [0, 0], sizes = [8, 16], strides = [1, 1]} : vector<16x32xf32> to vector<8x16xf32>
    %218 = vector.extract_strided_slice %214 {offsets = [0, 16], sizes = [8, 16], strides = [1, 1]} : vector<16x32xf32> to vector<8x16xf32>
    %219 = vector.extract_strided_slice %214 {offsets = [8, 0], sizes = [8, 16], strides = [1, 1]} : vector<16x32xf32> to vector<8x16xf32>
    %220 = vector.extract_strided_slice %214 {offsets = [8, 16], sizes = [8, 16], strides = [1, 1]} : vector<16x32xf32> to vector<8x16xf32>
    %221 = tpu.concatenate %217, %218, %219, %220 in 0 : vector<8x16xf32>, vector<8x16xf32>, vector<8x16xf32>, vector<8x16xf32> -> vector<32x16xf32>
    %222 = vector.extract_strided_slice %215 {offsets = [0, 0], sizes = [8, 16], strides = [1, 1]} : vector<16x32xf32> to vector<8x16xf32>
    %223 = vector.extract_strided_slice %215 {offsets = [0, 16], sizes = [8, 16], strides = [1, 1]} : vector<16x32xf32> to vector<8x16xf32>
    %224 = vector.extract_strided_slice %215 {offsets = [8, 0], sizes = [8, 16], strides = [1, 1]} : vector<16x32xf32> to vector<8x16xf32>
    %225 = vector.extract_strided_slice %215 {offsets = [8, 16], sizes = [8, 16], strides = [1, 1]} : vector<16x32xf32> to vector<8x16xf32>
    %226 = tpu.concatenate %222, %223, %224, %225 in 0 : vector<8x16xf32>, vector<8x16xf32>, vector<8x16xf32>, vector<8x16xf32> -> vector<32x16xf32>
    %227 = vector.extract_strided_slice %216 {offsets = [0, 0], sizes = [8, 16], strides = [1, 1]} : vector<16x32xf32> to vector<8x16xf32>
    %228 = vector.extract_strided_slice %216 {offsets = [0, 16], sizes = [8, 16], strides = [1, 1]} : vector<16x32xf32> to vector<8x16xf32>
    %229 = vector.extract_strided_slice %216 {offsets = [8, 0], sizes = [8, 16], strides = [1, 1]} : vector<16x32xf32> to vector<8x16xf32>
    %230 = vector.extract_strided_slice %216 {offsets = [8, 16], sizes = [8, 16], strides = [1, 1]} : vector<16x32xf32> to vector<8x16xf32>
    %231 = tpu.concatenate %227, %228, %229, %230 in 0 : vector<8x16xf32>, vector<8x16xf32>, vector<8x16xf32>, vector<8x16xf32> -> vector<32x16xf32>
    %cst_92 = arith.constant dense<0.000000e+00> : vector<32x32xf32>
    %232 = tpu.matmul %221, %226, %cst_92 {dimension_numbers = #tpu.dot_dimension_numbers<[1], [1], [0], [0], [0, 0, 1, 0], [], []>} : vector<32x16xf32>, vector<32x16xf32>, vector<32x32xf32> -> vector<32x32xf32>
    %cst_93 = arith.constant 2.500000e-01 : f32
    %233 = vector.broadcast %cst_93 : f32 to vector<32x32xf32>
    %234 = arith.mulf %232, %233 : vector<32x32xf32>
    %235 = vector.broadcast %62 : vector<1x32xf32> to vector<32x32xf32>
    %236 = arith.addf %234, %235 : vector<32x32xf32>
    %cst_94 = arith.constant -1.000000e+30 : f32
    %237 = vector.broadcast %cst_94 : f32 to vector<32x32xf32>
    %238 = arith.select %69, %236, %237 : vector<32x32xi1>, vector<32x32xf32>
    %cst_95 = arith.constant dense<0xFF800000> : vector<32xf32>
    %239 = vector.multi_reduction <maximumf>, %238, %cst_95 [1] : vector<32x32xf32> to vector<32xf32>
    %240 = vector.shape_cast %239 : vector<32xf32> to vector<32x1xf32>
    %241 = vector.broadcast %240 : vector<32x1xf32> to vector<32x32xf32>
    %242 = arith.subf %238, %241 : vector<32x32xf32>
    %243 = math.exp %242 : vector<32x32xf32>
    %cst_96 = arith.constant dense<0.000000e+00> : vector<32xf32>
    %244 = vector.multi_reduction <add>, %243, %cst_96 [1] : vector<32x32xf32> to vector<32xf32>
    %245 = vector.shape_cast %244 : vector<32xf32> to vector<32x1xf32>
    %246 = vector.broadcast %245 : vector<32x1xf32> to vector<32x32xf32>
    %247 = arith.divf %243, %246 : vector<32x32xf32>
    %cst_97 = arith.constant dense<0.000000e+00> : vector<32x16xf32>
    %248 = tpu.matmul %247, %231, %cst_97 {dimension_numbers = #tpu.dot_dimension_numbers<[1], [0], [0], [1], [0, 0, 1, 1], [], []>} : vector<32x32xf32>, vector<32x16xf32>, vector<32x16xf32> -> vector<32x16xf32>
    %249 = vector.extract_strided_slice %248 {offsets = [0, 0], sizes = [8, 16], strides = [1, 1]} : vector<32x16xf32> to vector<8x16xf32>
    %250 = vector.extract_strided_slice %248 {offsets = [8, 0], sizes = [8, 16], strides = [1, 1]} : vector<32x16xf32> to vector<8x16xf32>
    %251 = tpu.concatenate %249, %250 in 1 : vector<8x16xf32>, vector<8x16xf32> -> vector<8x32xf32>
    %252 = vector.extract_strided_slice %248 {offsets = [16, 0], sizes = [8, 16], strides = [1, 1]} : vector<32x16xf32> to vector<8x16xf32>
    %253 = vector.extract_strided_slice %248 {offsets = [24, 0], sizes = [8, 16], strides = [1, 1]} : vector<32x16xf32> to vector<8x16xf32>
    %254 = tpu.concatenate %252, %253 in 1 : vector<8x16xf32>, vector<8x16xf32> -> vector<8x32xf32>
    %255 = tpu.concatenate %251, %254 in 0 : vector<8x32xf32>, vector<8x32xf32> -> vector<16x32xf32>
    %c1_98 = arith.constant 1 : index
    %c0_99 = arith.constant 0 : index
    %c0_100 = arith.constant 0 : index
    %256 = vector.load %arg10[%c1_98, %c0_99, %c0_100] : memref<2x32x32xf32, #tpu.memory_space<vmem>>, vector<1x32x32xf32>
    %257 = vector.shape_cast %256 : vector<1x32x32xf32> to vector<32x32xf32>
    %cst_101 = arith.constant dense<0.000000e+00> : vector<16x32xf32>
    %258 = tpu.matmul %255, %257, %cst_101 {dimension_numbers = #tpu.dot_dimension_numbers<[1], [0], [0], [1], [0, 0, 1, 1], [], []>} : vector<16x32xf32>, vector<32x32xf32>, vector<16x32xf32> -> vector<16x32xf32>
    %c1_102 = arith.constant 1 : index
    %c0_103 = arith.constant 0 : index
    %c0_104 = arith.constant 0 : index
    %259 = vector.load %arg11[%c1_102, %c0_103, %c0_104] : memref<2x1x32xf32, #tpu.memory_space<vmem>>, vector<1x1x32xf32>
    %260 = vector.shape_cast %259 : vector<1x1x32xf32> to vector<1x32xf32>
    %261 = vector.broadcast %260 : vector<1x32xf32> to vector<16x32xf32>
    %262 = arith.addf %258, %261 : vector<16x32xf32>
    %263 = arith.addf %262, %206 : vector<16x32xf32>
    %c1_105 = arith.constant 1 : index
    %c0_106 = arith.constant 0 : index
    %c0_107 = arith.constant 0 : index
    %264 = vector.load %arg12[%c1_105, %c0_106, %c0_107] : memref<2x1x32xf32, #tpu.memory_space<vmem>>, vector<1x1x32xf32>
    %265 = vector.shape_cast %264 : vector<1x1x32xf32> to vector<1x32xf32>
    %c1_108 = arith.constant 1 : index
    %c0_109 = arith.constant 0 : index
    %c0_110 = arith.constant 0 : index
    %266 = vector.load %arg13[%c1_108, %c0_109, %c0_110] : memref<2x1x32xf32, #tpu.memory_space<vmem>>, vector<1x1x32xf32>
    %267 = vector.shape_cast %266 : vector<1x1x32xf32> to vector<1x32xf32>
    %cst_111 = arith.constant dense<0.000000e+00> : vector<16xf32>
    %268 = vector.multi_reduction <add>, %263, %cst_111 [1] : vector<16x32xf32> to vector<16xf32>
    %269 = vector.shape_cast %268 : vector<16xf32> to vector<16x1xf32>
    %cst_112 = arith.constant 3.200000e+01 : f32
    %270 = vector.broadcast %cst_112 : f32 to vector<16x1xf32>
    %271 = arith.divf %269, %270 : vector<16x1xf32>
    %272 = vector.broadcast %271 : vector<16x1xf32> to vector<16x32xf32>
    %273 = arith.subf %263, %272 : vector<16x32xf32>
    %274 = arith.mulf %273, %273 : vector<16x32xf32>
    %cst_113 = arith.constant dense<0.000000e+00> : vector<16xf32>
    %275 = vector.multi_reduction <add>, %274, %cst_113 [1] : vector<16x32xf32> to vector<16xf32>
    %276 = vector.shape_cast %275 : vector<16xf32> to vector<16x1xf32>
    %cst_114 = arith.constant 3.200000e+01 : f32
    %277 = vector.broadcast %cst_114 : f32 to vector<16x1xf32>
    %278 = arith.divf %276, %277 : vector<16x1xf32>
    %279 = vector.broadcast %271 : vector<16x1xf32> to vector<16x32xf32>
    %280 = arith.subf %263, %279 : vector<16x32xf32>
    %cst_115 = arith.constant 9.99999996E-13 : f32
    %281 = vector.broadcast %cst_115 : f32 to vector<16x1xf32>
    %282 = arith.addf %278, %281 : vector<16x1xf32>
    %283 = math.rsqrt %282 : vector<16x1xf32>
    %284 = vector.broadcast %283 : vector<16x1xf32> to vector<16x32xf32>
    %285 = arith.mulf %280, %284 : vector<16x32xf32>
    %286 = vector.broadcast %265 : vector<1x32xf32> to vector<16x32xf32>
    %287 = arith.mulf %285, %286 : vector<16x32xf32>
    %288 = vector.broadcast %267 : vector<1x32xf32> to vector<16x32xf32>
    %289 = arith.addf %287, %288 : vector<16x32xf32>
    %c1_116 = arith.constant 1 : index
    %c0_117 = arith.constant 0 : index
    %c0_118 = arith.constant 0 : index
    %290 = vector.load %arg14[%c1_116, %c0_117, %c0_118] : memref<2x32x64xf32, #tpu.memory_space<vmem>>, vector<1x32x64xf32>
    %291 = vector.shape_cast %290 : vector<1x32x64xf32> to vector<32x64xf32>
    %cst_119 = arith.constant dense<0.000000e+00> : vector<16x64xf32>
    %292 = tpu.matmul %289, %291, %cst_119 {dimension_numbers = #tpu.dot_dimension_numbers<[1], [0], [0], [1], [0, 0, 1, 1], [], []>} : vector<16x32xf32>, vector<32x64xf32>, vector<16x64xf32> -> vector<16x64xf32>
    %c1_120 = arith.constant 1 : index
    %c0_121 = arith.constant 0 : index
    %c0_122 = arith.constant 0 : index
    %293 = vector.load %arg15[%c1_120, %c0_121, %c0_122] : memref<2x1x64xf32, #tpu.memory_space<vmem>>, vector<1x1x64xf32>
    %294 = vector.shape_cast %293 : vector<1x1x64xf32> to vector<1x64xf32>
    %295 = vector.broadcast %294 : vector<1x64xf32> to vector<16x64xf32>
    %296 = arith.addf %292, %295 : vector<16x64xf32>
    %cst_123 = arith.constant 5.000000e-01 : f32
    %297 = vector.broadcast %cst_123 : f32 to vector<16x64xf32>
    %298 = arith.mulf %297, %296 : vector<16x64xf32>
    %cst_124 = arith.constant 4.471500e-02 : f32
    %299 = vector.broadcast %cst_124 : f32 to vector<16x64xf32>
    %300 = arith.mulf %299, %296 : vector<16x64xf32>
    %301 = arith.mulf %300, %296 : vector<16x64xf32>
    %302 = arith.mulf %301, %296 : vector<16x64xf32>
    %303 = arith.addf %296, %302 : vector<16x64xf32>
    %cst_125 = arith.constant 0.797884583 : f32
    %304 = vector.broadcast %cst_125 : f32 to vector<16x64xf32>
    %305 = arith.mulf %304, %303 : vector<16x64xf32>
    %306 = math.tanh %305 : vector<16x64xf32>
    %cst_126 = arith.constant 1.000000e+00 : f32
    %307 = vector.broadcast %cst_126 : f32 to vector<16x64xf32>
    %308 = arith.addf %307, %306 : vector<16x64xf32>
    %309 = arith.mulf %298, %308 : vector<16x64xf32>
    %c1_127 = arith.constant 1 : index
    %c0_128 = arith.constant 0 : index
    %c0_129 = arith.constant 0 : index
    %310 = vector.load %arg16[%c1_127, %c0_128, %c0_129] : memref<2x64x32xf32, #tpu.memory_space<vmem>>, vector<1x64x32xf32>
    %311 = vector.shape_cast %310 : vector<1x64x32xf32> to vector<64x32xf32>
    %cst_130 = arith.constant dense<0.000000e+00> : vector<16x32xf32>
    %312 = tpu.matmul %309, %311, %cst_130 {dimension_numbers = #tpu.dot_dimension_numbers<[1], [0], [0], [1], [0, 0, 1, 1], [], []>} : vector<16x64xf32>, vector<64x32xf32>, vector<16x32xf32> -> vector<16x32xf32>
    %c1_131 = arith.constant 1 : index
    %c0_132 = arith.constant 0 : index
    %c0_133 = arith.constant 0 : index
    %313 = vector.load %arg17[%c1_131, %c0_132, %c0_133] : memref<2x1x32xf32, #tpu.memory_space<vmem>>, vector<1x1x32xf32>
    %314 = vector.shape_cast %313 : vector<1x1x32xf32> to vector<1x32xf32>
    %315 = vector.broadcast %314 : vector<1x32xf32> to vector<16x32xf32>
    %316 = arith.addf %312, %315 : vector<16x32xf32>
    %317 = arith.addf %316, %289 : vector<16x32xf32>
    %c1_134 = arith.constant 1 : index
    %c0_135 = arith.constant 0 : index
    %c0_136 = arith.constant 0 : index
    %318 = vector.load %arg18[%c1_134, %c0_135, %c0_136] : memref<2x1x32xf32, #tpu.memory_space<vmem>>, vector<1x1x32xf32>
    %319 = vector.shape_cast %318 : vector<1x1x32xf32> to vector<1x32xf32>
    %c1_137 = arith.constant 1 : index
    %c0_138 = arith.constant 0 : index
    %c0_139 = arith.constant 0 : index
    %320 = vector.load %arg19[%c1_137, %c0_138, %c0_139] : memref<2x1x32xf32, #tpu.memory_space<vmem>>, vector<1x1x32xf32>
    %321 = vector.shape_cast %320 : vector<1x1x32xf32> to vector<1x32xf32>
    %cst_140 = arith.constant dense<0.000000e+00> : vector<16xf32>
    %322 = vector.multi_reduction <add>, %317, %cst_140 [1] : vector<16x32xf32> to vector<16xf32>
    %323 = vector.shape_cast %322 : vector<16xf32> to vector<16x1xf32>
    %cst_141 = arith.constant 3.200000e+01 : f32
    %324 = vector.broadcast %cst_141 : f32 to vector<16x1xf32>
    %325 = arith.divf %323, %324 : vector<16x1xf32>
    %326 = vector.broadcast %325 : vector<16x1xf32> to vector<16x32xf32>
    %327 = arith.subf %317, %326 : vector<16x32xf32>
    %328 = arith.mulf %327, %327 : vector<16x32xf32>
    %cst_142 = arith.constant dense<0.000000e+00> : vector<16xf32>
    %329 = vector.multi_reduction <add>, %328, %cst_142 [1] : vector<16x32xf32> to vector<16xf32>
    %330 = vector.shape_cast %329 : vector<16xf32> to vector<16x1xf32>
    %cst_143 = arith.constant 3.200000e+01 : f32
    %331 = vector.broadcast %cst_143 : f32 to vector<16x1xf32>
    %332 = arith.divf %330, %331 : vector<16x1xf32>
    %333 = vector.broadcast %325 : vector<16x1xf32> to vector<16x32xf32>
    %334 = arith.subf %317, %333 : vector<16x32xf32>
    %cst_144 = arith.constant 9.99999996E-13 : f32
    %335 = vector.broadcast %cst_144 : f32 to vector<16x1xf32>
    %336 = arith.addf %332, %335 : vector<16x1xf32>
    %337 = math.rsqrt %336 : vector<16x1xf32>
    %338 = vector.broadcast %337 : vector<16x1xf32> to vector<16x32xf32>
    %339 = arith.mulf %334, %338 : vector<16x32xf32>
    %340 = vector.broadcast %319 : vector<1x32xf32> to vector<16x32xf32>
    %341 = arith.mulf %339, %340 : vector<16x32xf32>
    %342 = vector.broadcast %321 : vector<1x32xf32> to vector<16x32xf32>
    %343 = arith.addf %341, %342 : vector<16x32xf32>
    %344 = vector.extract_strided_slice %343 {offsets = [0, 0], sizes = [1, 32], strides = [1, 1]} : vector<16x32xf32> to vector<1x32xf32>
    %345 = vector.extract_strided_slice %343 {offsets = [8, 0], sizes = [1, 32], strides = [1, 1]} : vector<16x32xf32> to vector<1x32xf32>
    %346 = tpu.concatenate %344, %345 in 0 : vector<1x32xf32>, vector<1x32xf32> -> vector<2x32xf32>
    %c0_145 = arith.constant 0 : index
    %c0_146 = arith.constant 0 : index
    %347 = vector.load %arg20[%c0_145, %c0_146] : memref<32x32xf32, #tpu.memory_space<vmem>>, vector<32x32xf32>
    %cst_147 = arith.constant dense<0.000000e+00> : vector<2x32xf32>
    %348 = tpu.matmul %346, %347, %cst_147 {dimension_numbers = #tpu.dot_dimension_numbers<[1], [0], [0], [1], [0, 0, 1, 1], [], []>} : vector<2x32xf32>, vector<32x32xf32>, vector<2x32xf32> -> vector<2x32xf32>
    %c0_148 = arith.constant 0 : index
    %c0_149 = arith.constant 0 : index
    %349 = vector.load %arg21[%c0_148, %c0_149] : memref<1x32xf32, #tpu.memory_space<vmem>>, vector<1x32xf32>
    %350 = vector.broadcast %349 : vector<1x32xf32> to vector<2x32xf32>
    %351 = arith.addf %348, %350 : vector<2x32xf32>
    %352 = math.tanh %351 : vector<2x32xf32>
    %c0_150 = arith.constant 0 : index
    %c0_151 = arith.constant 0 : index
    %353 = vector.load %arg22[%c0_150, %c0_151] : memref<32x4xf32, #tpu.memory_space<vmem>>, vector<32x4xf32>
    %cst_152 = arith.constant dense<0.000000e+00> : vector<2x4xf32>
    %354 = tpu.matmul %352, %353, %cst_152 {dimension_numbers = #tpu.dot_dimension_numbers<[1], [0], [0], [1], [0, 0, 1, 1], [], []>} : vector<2x32xf32>, vector<32x4xf32>, vector<2x4xf32> -> vector<2x4xf32>
    %c0_153 = arith.constant 0 : index
    %c0_154 = arith.constant 0 : index
    %355 = vector.load %arg23[%c0_153, %c0_154] : memref<1x4xf32, #tpu.memory_space<vmem>>, vector<1x4xf32>
    %356 = vector.broadcast %355 : vector<1x4xf32> to vector<2x4xf32>
    %357 = arith.addf %354, %356 : vector<2x4xf32>
    %c0_155 = arith.constant 0 : index
    %c0_156 = arith.constant 0 : index
    %358 = vector.load %arg24[%c0_155, %c0_156] : memref<2x4xf32, #tpu.memory_space<vmem>>, vector<2x4xf32>
    tpu.vector_store %arg24[%c0_155, %c0_156], %357 {strides = array<i32>} : memref<2x4xf32, #tpu.memory_space<vmem>>, vector<2x4xf32>,
    return
  }
}

</mosaic_0001>

<bundles_post_ra>
// kernel: bert_model_forward.1
= control target key start
LH: loop header
LB: loop body
LE: loop exit
PB: predicated region body
PF: predicated region fallthrough
CT: control target
= control target key end

     0   :  { %s3415_s0 = inlined_call_operand.vmem [shape: s32[16,1], index: 0, kind: input, shape index: {}]   ;;  %s3416_s1 = inlined_call_operand.vmem [shape: s32[16,1], index: 1, kind: input, shape index: {}]   ;;  %s3417_s2 = inlined_call_operand.vmem [shape: s32[2,8], index: 2, kind: input, shape index: {}]   ;;  %s3418_s3 = inlined_call_operand.vmem [shape: f32[100,32], index: 3, kind: input, shape index: {}]   ;;  %s3419_s4 = inlined_call_operand.vmem [shape: f32[16,32], index: 4, kind: input, shape index: {}]   ;;  %s3420_s5 = inlined_call_operand.vmem [shape: f32[2,32], index: 5, kind: input, shape index: {}]   ;;  %s3421_s6 = inlined_call_operand.vmem [shape: f32[1,32], index: 6, kind: input, shape index: {}]   ;;  %s3422_s7 = inlined_call_operand.vmem [shape: f32[1,32], index: 7, kind: input, shape index: {}]   ;;  %s3423_s8 = inlined_call_operand.vmem [shape: f32[2,32,96], index: 8, kind: input, shape index: {}]   ;;  %s3424_s9 = inlined_call_operand.vmem [shape: f32[2,1,96], index: 9, kind: input, shape index: {}]   ;;  %s3425_s10 = inlined_call_operand.vmem [shape: f32[2,32,32], index: 10, kind: input, shape index: {}]   ;;  %s3426_s11 = inlined_call_operand.vmem [shape: f32[2,1,32], index: 11, kind: input, shape index: {}]   ;;  %s3427_s12 = inlined_call_operand.vmem [shape: f32[2,1,32], index: 12, kind: input, shape index: {}]   ;;  %s3428_s13 = inlined_call_operand.vmem [shape: f32[2,1,32], index: 13, kind: input, shape index: {}]   ;;  %s3429_s14 = inlined_call_operand.vmem [shape: f32[2,32,64], index: 14, kind: input, shape index: {}]   ;;  %s3430_s15 = inlined_call_operand.vmem [shape: f32[2,1,64], index: 15, kind: input, shape index: {}]   ;;  %s3431_s16 = inlined_call_operand.vmem [shape: f32[2,64,32], index: 16, kind: input, shape index: {}]   ;;  %s3432_s17 = inlined_call_operand.vmem [shape: f32[2,1,32], index: 17, kind: input, shape index: {}]   ;;  %s3433_s18 = inlined_call_operand.vmem [shape: f32[2,1,32], index: 18, kind: input, shape index: {}]   ;;  %s3434_s19 = inlined_call_operand.vmem [shape: f32[2,1,32], index: 19, kind: input, shape index: {}]   ;;  %s3435_s20 = inlined_call_operand.vmem [shape: f32[32,32], index: 20, kind: input, shape index: {}]   ;;  %s3436_s21 = inlined_call_operand.vmem [shape: f32[1,32], index: 21, kind: input, shape index: {}]   ;;  %s3437_s22 = inlined_call_operand.vmem [shape: f32[32,4], index: 22, kind: input, shape index: {}]   ;;  %s3438_s23 = inlined_call_operand.vmem [shape: f32[1,4], index: 23, kind: input, shape index: {}]   ;;  %s3439_s24 = inlined_call_operand.hbm [shape: f32[2,4], index: 24, kind: output, shape index: {}]  }
   0x1   :  { %3446 = sst [smem:[#allocation5_spill]] %s3415_s0 }
   0x2   :  { %3447 = sst [smem:[#allocation6_spill]] %s3416_s1 }
   0x3   :  { %3448 = sst [smem:[#allocation7_spill]] %s3417_s2 }
   0x4   :  { %3449 = sst [smem:[#allocation8_spill]] %s3418_s3 }
   0x5   :  { %3450 = sst [smem:[#allocation9_spill]] %s3419_s4 }
   0x6   :  { %3451 = sst [smem:[#allocation10_spill]] %s3420_s5 }
   0x7   :  { %3452 = sst [smem:[#allocation11_spill]] %s3421_s6 }
   0x8   :  { %3453 = sst [smem:[#allocation12_spill]] %s3422_s7 }
   0x9   :  { %3454 = sst [smem:[#allocation13_spill]] %s3423_s8 }
   0xa   :  { %3455 = sst [smem:[#allocation14_spill]] %s3434_s19 }
   0xb   :  { %s3456_s27 = sld [smem:[#allocation5_spill]]  ;;  %s3457_s19 = sld [smem:[#allocation6_spill]]  ;;  %v2797_v2 = vmov 0   ;;  %v2798_v9 = vmov 0.0  }
   0xc   :  { %2664 = vset.pattern.permute.xlu0 %v2797_v2  ;;  %s3458_s0 = sld [smem:[#allocation8_spill]]  ;;  %2665 = vset.pattern.permute.xlu1 %v2797_v2 }
  0x11   :  { %v78_v0 = vld [vmem:[%s3456_s27] sm:$0xff]  ;;  %v108_v1 = vld [vmem:[%s3457_s19 + $0x8] sm:$0xff] }
  0x12   :  { %vm110_vm0 = vcmp.gt.s32.totalorder %v108_v1, 0  ;;  %v94_v3 = vld [vmem:[%s3458_s0] sm:$0xff]  ;;  %v95_v4 = vld [vmem:[%s3458_s0 + $0x8] sm:$0xff]  ;;  %v96_v5 = vld [vmem:[%s3458_s0 + $0x10] sm:$0xff]  ;;  %83 = vperm.xlu0 %2664, %v78_v0  }
  0x13   :  { %v2497_v6 = vpack.c.bf16 %v95_v4, %v94_v3  ;;  %v97_v7 = vld [vmem:[%s3458_s0 + $0x18] sm:$0xff]  ;;  %v79_v8 = vld [vmem:[%s3456_s27 + $0x8] sm:$0xff]  ;;  %v2077_v10 = vsel %vm110_vm0, 1.0, %v2798_v9  ;;  %v98_v12 = vld [vmem:[%s3458_s0 + $0x20] sm:$0xff] }
  0x14   :  { %v2501_v11 = vpack.c.bf16 %v97_v7, %v96_v5  ;;  %v99_v13 = vld [vmem:[%s3458_s0 + $0x28] sm:$0xff] }
  0x15   :  { %2498 = vmatprep.subr.bf16.mxu0 %v2497_v6 }
  0x16   :  { %2500 = vmatpush3.bf16.msra.mxu0 %v2497_v6 }
  0x17   :  { %29 = vsyncpa [#allocation3], 0  ;;  %86 = vperm.xlu0 %2664, %v79_v8   ;;  %v219_v14 = vsub.f32 1.0, %v2077_v10  ;;  %2502 = vmatprep.subr.bf16.mxu0 %v2501_v11  ;;  %v2505_v15 = vpack.c.bf16 %v99_v13, %v98_v12  ;;  %v100_v16 = vld [vmem:[%s3458_s0 + $0x30] sm:$0xff]  ;;  %v101_v17 = vld [vmem:[%s3458_s0 + $0x38] sm:$0xff]  ;;  %vm139_vm2 = vcmask 1043456   ;;  %v80_v30 = vlaneseq }
  0x18   :  { %v2509_v18 = vpack.c.bf16 %v101_v17, %v100_v16  ;;  %v107_v19 = vld [vmem:[%s3457_s19] sm:$0xff]  ;;  %v103_v21 = vld [vmem:[%s3458_s0 + $0x48] sm:$0xff]  ;;  %v104_v25 = vld [vmem:[%s3458_s0 + $0x50] sm:$0xff]  ;;  %vm132_vm3 = vcmask 818176   ;;  %s3459_s7 = sld [smem:[#allocation10_spill]]  ;;  %s3460_s4 = sld [smem:[#allocation9_spill]] }
  0x19   :  { %v102_v20 = vld [vmem:[%s3458_s0 + $0x40] sm:$0xff]  ;;  %vm109_vm1 = vcmp.gt.s32.totalorder %v107_v19, 0  ;;  %v105_v26 = vld [vmem:[%s3458_s0 + $0x58] sm:$0xff]  ;;  %v2987_v31 = vand.u32 127, %v80_v30  ;;  %vm244_vm6 = vcmask 261120   ;;  %s3461_s26 = sld [smem:[#allocation13_spill]] }
  0x1a   :  { %2504 = vmatpush3.bf16.msra.mxu0 %v2501_v11  ;;  %v2076_v22 = vsel %vm109_vm1, 1.0, %v2798_v9  ;;  %v2513_v24 = vpack.c.bf16 %v103_v21, %v102_v20  ;;  %v2517_v28 = vpack.c.bf16 %v105_v26, %v104_v25  ;;  %v106_v29 = vld [vmem:[%s3458_s0 + $0x60] sm:$0xf]  ;;  %s3462_s30 = sld [smem:[#allocation11_spill]]  ;;  %s3463_s8 = sld [smem:[#allocation12_spill]]  ;;  %vm305_vm7 = vcmask 130048  }
  0x1b   :  { %228 = vperm.xlu0 %2664, %v219_v14   ;;  %2506 = vmatprep.subr.bf16.mxu0 %v2505_v15  ;;  %v2666_v23 = vpack.i.bf16 %v2077_v10, %v2076_v22  ;;  %v218_v27 = vsub.f32 1.0, %v2076_v22  ;;  %s2799_s5 = smov 112   ;;  %s2800_s28 = smov 96   ;;  %vm3052_vm8 = vmpackc.low %vm305_vm7, %vm305_vm7  ;;  %vm303_vm9 = vcmask 64512   ;;  %vm307_vm10 = vcmask 195584  }
  0x1c   :  { %s3464_s2 = sld [smem:[#allocation7_spill]]  ;;  %s2801_s27 = smov 8   ;;  %vm972_vm15 = vcmask 523264   ;;  %vm2806_vm0 = vmmov 0   ;;  %vm1887_vm1 = vcmask 1040384  }
  0x1d   :  { %2667 = vperm.xlu1 %2665, %v2666_v23   ;;  %s2802_s0 = smov 16   ;;  %s2803_s29 = smov 24  }
  0x1e   :  { %2508 = vmatpush3.bf16.msra.mxu0 %v2505_v15  ;;  %v2078_v39 = vld [vmem:[%s3459_s7 + $0x1] ss:$0 sm:$0xff]  ;;  %v2082_v41 = vld [vmem:[%s3459_s7] ss:$0 sm:$0xff]  ;;  %s2804_s7 = smov 64  }
  0x1f   :  { %2510 = vmatprep.subr.bf16.mxu0 %v2509_v18  ;;  %v239_v51 = vld [vmem:[%s3460_s4] sm:$0xff]  ;;  %v324_v5 = vld [vmem:[%s3461_s26 + $0x8] sm:$0xff]  ;;  %v325_v6 = vld [vmem:[%s3461_s26 + $0x10] sm:$0xff] }
  0x20   :  { %v323_v4 = vld [vmem:[%s3461_s26] sm:$0xff]  ;;  %v326_v8 = vld [vmem:[%s3461_s26 + $0x18] sm:$0xff] }
  0x21   :  { %223 = vperm.xlu1 %2665, %v218_v27   ;;  %v2521_v7 = vpack.c.bf16 %v324_v5, %v323_v4  ;;  %v2525_v10 = vpack.c.bf16 %v326_v8, %v325_v6  ;;  %v2084_v22 = vld [vmem:[%s3463_s8] ss:$0 sm:$0xff] }
  0x22   :  { %2512 = vmatpush3.bf16.msra.mxu0 %v2509_v18  ;;  %v2083_v18 = vld [vmem:[%s3462_s30] ss:$0 sm:$0xff] }
  0x23   :  { %2514 = vmatprep.subr.bf16.mxu0 %v2513_v24  ;;  %2522 = vmatprep.subr.bf16.mxu1 %v2521_v7  ;;  %v2085_v27 = vld [vmem:[%s3424_s9] ss:$0 sm:$0xff] }
  0x24   :  { %2524 = vmatpush3.bf16.msra.mxu1 %v2521_v7 }
  0x25   :  { %2526 = vmatprep.subr.bf16.mxu1 %v2525_v10 }
  0x26   :  { %2516 = vmatpush3.bf16.msra.mxu0 %v2513_v24 }
  0x27   :  { %2518 = vmatprep.subr.bf16.mxu0 %v2517_v28 }
  0x28   :  { %2528 = vmatpush3.bf16.msra.mxu1 %v2525_v10 }
  0x2a   :  { %2520 = vmatpush3.bf16.msra.mxu0 %v2517_v28 }
  0x2b   :  { %2310 = vmatprep.subr.msk.mxu0 %vm139_vm2, %v106_v29 }
  0x2e   :  { %2311 = vmatpush3.msk.msra.mxu0 %vm139_vm2, %v106_v29  ;;  %vm2058_vm2 = vcmask 25600  }
  0x91   :  { %v84_v32 = vpop.permute.xlu0 %83 }
  0x92   :  { %vm88_vm4 = vcmp.eq.s32.totalorder %v84_v32, %v2987_v31 }
  0x93   :  { %v2074_v33 = vsel %vm88_vm4, 1.0, %v2798_v9 }
  0x94   :  { %2312 = vmatprep.mubr.msk.f32.mxu0 %vm132_vm3, %v2074_v33 }
  0x96   :  { %v87_v34 = vpop.permute.xlu0 %86 }
  0x97   :  { %vm89_vm5 = vcmp.eq.s32.totalorder %v87_v34, %v2987_v31 }
  0x98   :  { %v2075_v35 = vsel %vm89_vm5, 1.0, %v2798_v9 }
  0x99   :  { %2313 = vmatmul.mubr.msk.f32.vlgmr.msra.gmra.mrb[0].mxu0 %vm132_vm3, %v2075_v35 }
  0x9a   :  { %v229_v42 = vpop.permute.xlu0 %228 }
  0x9b   :  { %v236_v46 = vmul.f32 %v2082_v41, %v229_v42 }
  0x9c   :  { %v2668_v36 = vpop.permute.xlu1 %2667 }
  0x9d   :  { %v2670_v37 = vunpack.i.h.bf16 %v2668_v36  ;;  %v2669_v38 = vunpack.i.l.bf16 %v2668_v36 }
  0x9f   :  { %v131_v40 = vmul.f32 %v2670_v37, %v2078_v39  ;;  %v130_v43 = vmul.f32 %v2669_v38, %v2078_v39  ;;  %v288_v38 = vld [vmem:[%s3464_s2] sm:$0x3] }
  0xa0   :  { %v224_v44 = vpop.permute.xlu1 %223  ;;  %v289_v39 = vcvt.s32.f32 %v288_v38 }
  0xa1   :  { %v235_v49 = vmul.f32 %v2082_v41, %v224_v44 }
 0x16c   :  { %v2314_v45 = vpop.f32.mrb[0].mxu0 }
 0x16d   :  { %v215_v47 = vadd.f32 %v2314_v45, %v131_v40  ;;  %v209_v48 = vpop.f32.mrb[1].mxu0  ;;  %v290_v40 = vsub.f32 1.0, %v289_v39 }
 0x16e   :  { %v210_v50 = vadd.f32 %v209_v48, %v130_v43 }
 0x16f   :  { %v238_v52 = vadd.f32 %v236_v46, %v215_v47  ;;  %v291_v41 = vmul.f32 -10000.0, %v290_v40 }
 0x170   :  { %v237_v53 = vadd.f32 %v235_v49, %v210_v50 }
 0x171   :  { %v241_v54 = vadd.f32 %v239_v51, %v238_v52  ;;  %v296_v42 = vrot.slane %v291_v41, 1 }
 0x172   :  { %v240_v55 = vadd.f32 %v239_v51, %v237_v53 }
 0x173   :  { %v248_v56 = vsel %vm244_vm6, %v241_v54, 0.0 }
 0x174   :  { %249 = vadd.xlane.f32.xlu0 %v248_v56  ;;  %v245_v57 = vsel %vm244_vm6, %v240_v55, 0.0 }
 0x175   :  { %246 = vadd.xlane.f32.xlu1 %v245_v57 }
 0x201   :  { %v250_v58 = vpop.xlane.xlu0 %249 }
 0x202   :  { %v253_v59 = vmul.f32 0.03125, %v250_v58  ;;  %v247_v60 = vpop.xlane.xlu1 %246 }
 0x203   :  { %v252_v61 = vmul.f32 0.03125, %v247_v60 }
 0x204   :  { %v255_v62 = vsub.f32 %v241_v54, %v253_v59 }
 0x205   :  { %v254_v63 = vsub.f32 %v240_v55, %v252_v61  ;;  %v310_v55 = vshrl.u32 %v80_v30, 7  ;;  %v318_v61 = vshrl.u32 %v2987_v31, 3 }
 0x206   :  { %v257_v0 = vmul.f32 %v255_v62, %v255_v62 }
 0x207   :  { %v256_v1 = vmul.f32 %v254_v63, %v254_v63  ;;  %v311_v58 = vadd.s32 8, %v310_v55  ;;  %v536_v59 = vsub.s32 0, %v310_v55  ;;  %v313_v5 = vadd.s32 24, %v310_v55 }
 0x208   :  { %v261_v2 = vsel %vm244_vm6, %v257_v0, 0.0  ;;  %v314_v0 = vshrl.u32 %v310_v55, 3 }
 0x209   :  { %262 = vadd.xlane.f32.xlu1 %v261_v2  ;;  %v258_v3 = vsel %vm244_vm6, %v256_v1, 0.0  ;;  %v312_v1 = vadd.s32 16, %v310_v55 }
 0x20a   :  { %259 = vadd.xlane.f32.xlu0 %v258_v3  ;;  %vm3077_vm12 = vcmp.eq.s32.totalorder %v314_v0, %v318_v61 }
 0x20b   :  { %v316_v31 = vshrl.u32 %v312_v1, 3 }
 0x20d   :  { %vm3088_vm13 = vcmp.eq.s32.totalorder %v316_v31, %v318_v61 }
 0x296   :  { %v263_v11 = vpop.xlane.xlu1 %262 }
 0x297   :  { %v265_v12 = vmul.f32 0.03125, %v263_v11  ;;  %v260_v13 = vpop.xlane.xlu0 %259 }
 0x298   :  { %v264_v14 = vmul.f32 0.03125, %v260_v13 }
 0x299   :  { %v267_v15 = vadd.f32 1e-12, %v265_v12 }
 0x29a   :  { %v266_v16 = vadd.f32 1e-12, %v264_v14 }
 0x29b   :  { %2711 = vrsqrt.f32 %v267_v15  ;;  %v317_v15 = vshrl.u32 %v313_v5, 3 }
 0x29c   :  { %2713 = vrsqrt.f32 %v266_v16 }
 0x29d   :  { %vm3094_vm14 = vcmp.eq.s32.totalorder %v317_v15, %v318_v61  ;;  %v712_v15 = vld [vmem:[%s3425_s10 + $0x18] sm:$0xff] }
 0x2a5   :  { %v2712_v17 = vpop.eup %2711 }
 0x2a6   :  { %v2714_v19 = vpop.eup %2713  ;;  %v271_v20 = vmul.f32 %v2712_v17, %v255_v62  ;;  %v315_v62 = vshrl.u32 %v311_v58, 3 }
 0x2a7   :  { %v270_v21 = vmul.f32 %v2714_v19, %v254_v63 }
 0x2a8   :  { %v279_v23 = vmul.f32 %v2083_v18, %v271_v20  ;;  %vm3072_vm11 = vcmp.eq.s32.totalorder %v315_v62, %v318_v61 }
 0x2a9   :  { %v278_v24 = vmul.f32 %v2083_v18, %v270_v21 }
 0x2aa   :  { %v3026_v26 = vadd.f32 %v2084_v22, %v279_v23 }
 0x2ab   :  { %v3024_v25 = vadd.f32 %v2084_v22, %v278_v24 }
 0x2ad   :  { %2323 = vmatprep.mubr.msk.f32.mxu1 %vm244_vm6, %v3024_v25 }
 0x2ae   :  { %2324 = vmatmul.mubr.msk.f32.vlgmr.msra.gmra.mrb[0].mxu1 %vm244_vm6, %v3026_v26 }
 0x381   :  { %v2325_v28 = vpop.f32.mrb[0].mxu1 }
 0x382   :  { %v412_v29 = vadd.f32 %v2325_v28, %v2085_v27  ;;  %v406_v32 = vpop.f32.mrb[1].mxu1 }
 0x383   :  { %v407_v33 = vadd.f32 %v2085_v27, %v406_v32 }
 0x384   :  { %419 = vrot.lane.b32.xlu1 %v412_v29, %s2799_s5 }
 0x385   :  { %416 = vrot.lane.b32.xlu0 %v407_v33, %s2799_s5  ;;  %2334 = vmatprep.mubr.msk.f32.mxu1 %vm305_vm7, %v407_v33 }
 0x3f6   :  { %v420_v34 = vpop.permute.xlu1 %419 }
 0x3f7   :  { %v3038_v35 = vpack.i.bf16 %v420_v34, %v412_v29  ;;  %v417_v36 = vpop.permute.xlu0 %416 }
 0x3f8   :  { %v3040_v37 = vpack.i.bf16 %v417_v36, %v407_v33 }
 0x3f9   :  { %2677 = vrot.lane.b32.xlu0 %v3038_v35, %s2800_s28 }
 0x3fa   :  { %2672 = vrot.lane.b32.xlu1 %v3040_v37, %s2800_s28 }
 0x3fd   :  { %297 = vrot.lane.b32.xlu0 %v296_v42, %s2802_s0 }
 0x3fe   :  { %293 = vrot.lane.b32.xlu1 %v291_v41, %s2801_s27  ;;  %s3475_s27 = sld [smem:[#allocation14_spill]] }
 0x402   :  { %300 = vrot.lane.b32.xlu1 %v296_v42, %s2803_s29 }
 0x46b   :  { %v2678_v43 = vpop.permute.xlu0 %2677 }
 0x46c   :  { %v2673_v44 = vpop.permute.xlu1 %2672  ;;  %v2680_v45 = vunpack.i.h.bf16 %v2678_v43  ;;  %v2679_v46 = vunpack.i.l.bf16 %v2678_v43 }
 0x46d   :  { %v2675_v47 = vunpack.i.h.bf16 %v2673_v44  ;;  %v2674_v48 = vunpack.i.l.bf16 %v2673_v44 }
 0x46e   :  { %v2535_v51 = vpack.c.bf16 %v2680_v45, %v2679_v46 }
 0x46f   :  { %v2529_v50 = vpack.c.bf16 %v2675_v47, %v2674_v48  ;;  %v298_v54 = vpop.permute.xlu0 %297 }
 0x470   :  { %v294_v52 = vpop.permute.xlu1 %293 }
 0x471   :  { %2531 = vmatprep.subr.msk.bf16.mxu1 %vm3052_vm8, %v2529_v50  ;;  %v304_v53 = vsel %vm303_vm9, %v291_v41, %v294_v52 }
 0x472   :  { %2534 = vmatpush3.bf16.xpose.msk.msra.mxu1 %vm3052_vm8, %v2529_v50  ;;  %v306_v56 = vsel %vm305_vm7, %v304_v53, %v298_v54 }
 0x473   :  { %2537 = vmatprep.subr.msk.bf16.mxu1 %vm3052_vm8, %v2535_v51 }
 0x474   :  { %v301_v57 = vpop.permute.xlu1 %300 }
 0x475   :  { %v308_v60 = vsel %vm307_vm10, %v306_v56, %v301_v57 }
 0x476   :  { %v3070_v63 = vrot.slane %v308_v60, %v536_v59 }
 0x47a   :  { %2540 = vmatpush3.bf16.xpose.msk.msra.mxu1 %vm3052_vm8, %v2535_v51 }
 0x481   :  { %2335 = vmatmul.mubr.msk.f32.vlgmr.msra.gmra.mrb[2].mxu1 %vm305_vm7, %v417_v36 }
 0x482   :  { %2337 = vmatprep.mubr.msk.f32.mxu1 %vm305_vm7, %v412_v29 }
 0x485   :  { %2338 = vmatmul.mubr.msk.f32.gmra.mrb[4].mxu1 %vm305_vm7, %v420_v34 }
 0x554   :  { %v2336_v2 = vpop.f32.mrb[2].mxu1 }
 0x555   :  { %v531_v3 = vmul.f32 0.25, %v2336_v2  ;;  %v511_v4 = vpop.f32.mrb[3].mxu1 }
 0x556   :  { %v530_v6 = vmul.f32 0.25, %v511_v4 }
 0x557   :  { %v539_v7 = vadd.f32 %v3070_v63, %v531_v3 }
 0x558   :  { %v538_v10 = vadd.f32 %v3070_v63, %v530_v6  ;;  %v2339_v11 = vpop.f32.mrb[4].mxu1 }
 0x559   :  { %v533_v12 = vmul.f32 0.25, %v2339_v11  ;;  %v521_v13 = vpop.f32.mrb[5].mxu1  ;;  %v543_v14 = vsel %vm3072_vm11, %v539_v7, -1e+30  ;;  %v709_v11 = vld [vmem:[%s3425_s10] sm:$0xff] }
 0x55a   :  { %v532_v16 = vmul.f32 0.25, %v521_v13  ;;  %v549_v17 = vsel %vm244_vm6, %v543_v14, -inf  ;;  %v542_v18 = vsel %vm3077_vm12, %v538_v10, -1e+30 }
 0x55b   :  { %550 = vmax.xlane.f32.xlu1 %v549_v17  ;;  %v546_v19 = vsel %vm244_vm6, %v542_v18, -inf  ;;  %v541_v21 = vadd.f32 %v3070_v63, %v533_v12  ;;  %v710_v12 = vld [vmem:[%s3425_s10 + $0x8] sm:$0xff] }
 0x55c   :  { %v540_v22 = vadd.f32 %v3070_v63, %v532_v16  ;;  %547 = vmax.xlane.f32.xlu0 %v546_v19  ;;  %v2549_v13 = vpack.c.bf16 %v710_v12, %v709_v11  ;;  %v959_v12 = vld [vmem:[%s3431_s16 + $0x10] sm:$0xff] }
 0x55d   :  { %v545_v28 = vsel %vm3094_vm14, %v541_v21, -1e+30 }
 0x55e   :  { %v544_v24 = vsel %vm3088_vm13, %v540_v22, -1e+30  ;;  %v555_v29 = vsel %vm244_vm6, %v545_v28, -inf  ;;  %2550 = vmatprep.subr.bf16.mxu0 %v2549_v13 }
 0x55f   :  { %v552_v27 = vsel %vm244_vm6, %v544_v24, -inf  ;;  %2552 = vmatpush3.bf16.msra.mxu0 %v2549_v13  ;;  %v960_v13 = vld [vmem:[%s3431_s16 + $0x18] sm:$0xff] }
 0x560   :  { %553 = vmax.xlane.f32.xlu0 %v552_v27 }
 0x564   :  { %556 = vmax.xlane.f32.xlu0 %v555_v29  ;;  %v2100_v29 = vld [vmem:[%s3426_s11] ss:$0 sm:$0xff] }
 0x5e8   :  { %v551_v32 = vpop.xlane.xlu1 %550 }
 0x5e9   :  { %v559_v33 = vsub.f32 %v543_v14, %v551_v32  ;;  %v548_v34 = vpop.xlane.xlu0 %547  ;;  %v711_v14 = vld [vmem:[%s3425_s10 + $0x10] sm:$0xff] }
 0x5ea   :  { %v558_v36 = vsub.f32 %v542_v18, %v548_v34  ;;  %v2553_v16 = vpack.c.bf16 %v712_v15, %v711_v14  ;;  %v961_v14 = vld [vmem:[%s3431_s16 + $0x20] sm:$0xff]  ;;  %v2569_v15 = vpack.c.bf16 %v960_v13, %v959_v12 }
 0x5eb   :  { %v564_v38 = vmul.f32 1.442695, %v559_v33 }
 0x5ec   :  { %v562_v39 = vmul.f32 1.442695, %v558_v36  ;;  %2554 = vmatprep.subr.bf16.mxu0 %v2553_v16 }
 0x5ed   :  { %2715 = vpow2.f32 %v564_v38  ;;  %v554_v40 = vpop.xlane.xlu0 %553  ;;  %2556 = vmatpush3.bf16.msra.mxu0 %v2553_v16  ;;  %v962_v16 = vld [vmem:[%s3431_s16 + $0x28] sm:$0xff] }
 0x5ee   :  { %2717 = vpow2.f32 %v562_v39  ;;  %v560_v41 = vsub.f32 %v544_v24, %v554_v40 }
 0x5f0   :  { %v566_v42 = vmul.f32 1.442695, %v560_v41 }
 0x5f1   :  { %v557_v43 = vpop.xlane.xlu0 %556 }
 0x5f2   :  { %2719 = vpow2.f32 %v566_v42  ;;  %v561_v44 = vsub.f32 %v545_v28, %v557_v43 }
 0x5f4   :  { %v568_v45 = vmul.f32 1.442695, %v561_v44 }
 0x5f6   :  { %2721 = vpow2.f32 %v568_v45 }
 0x5f7   :  { %v2716_v46 = vpop.eup %2715 }
 0x5f8   :  { %v2718_v47 = vpop.eup %2717  ;;  %v573_v48 = vsel %vm244_vm6, %v2716_v46, 0.0 }
 0x5f9   :  { %574 = vadd.xlane.f32.xlu0 %v573_v48  ;;  %v570_v50 = vsel %vm244_vm6, %v2718_v47, 0.0 }
 0x5fa   :  { %571 = vadd.xlane.f32.xlu1 %v570_v50 }
 0x5fc   :  { %v2720_v51 = vpop.eup %2719 }
 0x5fd   :  { %v576_v52 = vsel %vm244_vm6, %v2720_v51, 0.0 }
 0x5fe   :  { %577 = vadd.xlane.f32.xlu1 %v576_v52  ;;  %v848_v52 = vld [vmem:[%s3429_s14 + $0x8] sm:$0xff] }
 0x600   :  { %v2722_v53 = vpop.eup %2721 }
 0x601   :  { %v579_v54 = vsel %vm244_vm6, %v2722_v53, 0.0 }
 0x602   :  { %580 = vadd.xlane.f32.xlu0 %v579_v54  ;;  %v849_v54 = vld [vmem:[%s3429_s14 + $0x10] sm:$0xff] }
 0x60f   :  { %2682 = vrot.lane.b32.xlu1 %v3040_v37, %s2804_s7 }
 0x618   :  { %2687 = vrot.lane.b32.xlu0 %v3038_v35, %s2804_s7 }
 0x686   :  { %v575_v56 = vpop.xlane.xlu0 %574 }
 0x687   :  { %v572_v55 = vpop.xlane.xlu1 %571 }
 0x688   :  { %2723 = vrcp.f32 %v572_v55  ;;  %v850_v55 = vld [vmem:[%s3429_s14 + $0x18] sm:$0xff] }
 0x689   :  { %2725 = vrcp.f32 %v575_v56  ;;  %v2561_v56 = vpack.c.bf16 %v850_v55, %v849_v54 }
 0x68b   :  { %v578_v57 = vpop.xlane.xlu1 %577 }
 0x68c   :  { %2727 = vrcp.f32 %v578_v57 }
 0x68f   :  { %v2683_v58 = vpop.permute.xlu1 %2682  ;;  %v581_v59 = vpop.xlane.xlu0 %580 }
 0x690   :  { %v2685_v60 = vunpack.i.h.bf16 %v2683_v58  ;;  %v2684_v61 = vunpack.i.l.bf16 %v2683_v58  ;;  %2729 = vrcp.f32 %v581_v59 }
 0x692   :  { %v2724_v62 = vpop.eup %2723  ;;  %v2541_v0 = vpack.c.bf16 %v2685_v60, %v2684_v61 }
 0x693   :  { %v2688_v1 = vpop.permute.xlu0 %2687  ;;  %v583_v2 = vmul.f32 %v2724_v62, %v2718_v47  ;;  %v2726_v4 = vpop.eup %2725 }
 0x694   :  { %v2690_v3 = vunpack.i.h.bf16 %v2688_v1  ;;  %v2689_v37 = vunpack.i.l.bf16 %v2688_v1  ;;  %2542 = vmatprep.subr.bf16.mxu1 %v2541_v0  ;;  %v585_v6 = vmul.f32 %v2726_v4, %v2716_v46  ;;  %v2103_v1 = vld [vmem:[%s3427_s12] ss:$0 sm:$0xff] }
 0x695   :  { %2544 = vmatpush3.bf16.msra.mxu1 %v2541_v0  ;;  %2348 = vmatprep.mubr.msk.f32.mxu1 %vm244_vm6, %v583_v2 }
 0x696   :  { %v2545_v35 = vpack.c.bf16 %v2690_v3, %v2689_v37  ;;  %v2728_v5 = vpop.eup %2727  ;;  %v2104_v3 = vld [vmem:[%s3428_s13] ss:$0 sm:$0xff] }
 0x697   :  { %v587_v31 = vmul.f32 %v2728_v5, %v2720_v51 }
 0x698   :  { %2546 = vmatprep.subr.bf16.mxu1 %v2545_v35 }
 0x699   :  { %2548 = vmatpush3.bf16.msra.mxu1 %v2545_v35 }
 0x69a   :  { %v2730_v7 = vpop.eup %2729 }
 0x69b   :  { %v589_v10 = vmul.f32 %v2730_v7, %v2722_v53 }
 0x69c   :  { %2349 = vmatmul.mubr.msk.f32.vlgmr.msra.gmra.mrb[6].mxu1 %vm244_vm6, %v585_v6 }
 0x69d   :  { %2351 = vmatprep.mubr.msk.f32.mxu1 %vm244_vm6, %v587_v31  ;;  %v957_v31 = vld [vmem:[%s3431_s16] sm:$0xff] }
 0x6a0   :  { %2352 = vmatmul.mubr.msk.f32.gmra.mrb[8].mxu1 %vm244_vm6, %v589_v10  ;;  %v958_v10 = vld [vmem:[%s3431_s16 + $0x8] sm:$0xff] }
 0x6a1   :  { %v2565_v11 = vpack.c.bf16 %v958_v10, %v957_v31  ;;  %v2115_v31 = vld [vmem:[%s3461_s26 + $0x30] sm:$0xff]  ;;  %v2116_v10 = vld [vmem:[%s3461_s26 + $0x38] sm:$0xff] }
 0x6a3   :  { %2566 = vmatprep.subr.bf16.mxu0 %v2565_v11 }
 0x76f   :  { %v2350_v17 = vpop.f32.mrb[6].mxu1 }
 0x770   :  { %700 = vrot.lane.b32.xlu1 %v2350_v17, %s2802_s0  ;;  %v680_v18 = vpop.f32.mrb[7].mxu1  ;;  %v2573_v17 = vpack.c.bf16 %v962_v16, %v961_v14 }
 0x773   :  { %v2353_v19 = vpop.f32.mrb[8].mxu1 }
 0x774   :  { %705 = vrot.lane.b32.xlu1 %v2353_v19, %s2802_s0  ;;  %v690_v21 = vpop.f32.mrb[9].mxu1  ;;  %v964_v19 = vld [vmem:[%s3431_s16 + $0x38] sm:$0xff] }
 0x7e2   :  { %v701_v22 = vpop.permute.xlu1 %700 }
 0x7e3   :  { %v703_v24 = vsel %vm305_vm7, %v680_v18, %v701_v22  ;;  %v963_v18 = vld [vmem:[%s3431_s16 + $0x30] sm:$0xff]  ;;  %v2105_v22 = vld [vmem:[%s3430_s15] ss:$0 sm:$0xff] }
 0x7e4   :  { %2362 = vmatprep.mubr.msk.f32.mxu0 %vm244_vm6, %v703_v24 }
 0x7e6   :  { %v706_v27 = vpop.permute.xlu1 %705 }
 0x7e7   :  { %v708_v28 = vsel %vm305_vm7, %v690_v21, %v706_v27  ;;  %v2577_v21 = vpack.c.bf16 %v964_v19, %v963_v18  ;;  %v2111_v19 = vld [vmem:[%s3433_s18] ss:$0 sm:$0xff] }
 0x7e8   :  { %2363 = vmatmul.mubr.msk.f32.vlgmr.msra.gmra.mrb[2].mxu0 %vm244_vm6, %v708_v28 }
 0x7e9   :  { %2568 = vmatpush3.bf16.msra.mxu0 %v2565_v11  ;;  %v2585_v11 = vpack.c.bf16 %v2116_v10, %v2115_v31 }
 0x7ea   :  { %2570 = vmatprep.subr.bf16.mxu0 %v2569_v15 }
 0x7ed   :  { %2572 = vmatpush3.bf16.msra.mxu0 %v2569_v15 }
 0x7ee   :  { %2574 = vmatprep.subr.bf16.mxu0 %v2573_v17 }
 0x7f1   :  { %2576 = vmatpush3.bf16.msra.mxu0 %v2573_v17 }
 0x7f2   :  { %2578 = vmatprep.subr.bf16.mxu0 %v2577_v21 }
 0x7f5   :  { %2580 = vmatpush3.bf16.msra.mxu0 %v2577_v21 }
 0x8bb   :  { %v2364_v32 = vpop.f32.mrb[2].mxu0 }
 0x8bc   :  { %v798_v33 = vadd.f32 %v2364_v32, %v2100_v29  ;;  %v792_v34 = vpop.f32.mrb[3].mxu0 }
 0x8bd   :  { %v793_v36 = vadd.f32 %v2100_v29, %v792_v34 }
 0x8be   :  { %v802_v38 = vadd.f32 %v798_v33, %v3026_v26 }
 0x8bf   :  { %v801_v39 = vadd.f32 %v793_v36, %v3024_v25  ;;  %v847_v25 = vld [vmem:[%s3429_s14] sm:$0xff] }
 0x8c0   :  { %v808_v40 = vsel %vm244_vm6, %v802_v38, 0.0  ;;  %v2557_v53 = vpack.c.bf16 %v848_v52, %v847_v25  ;;  %v2108_v25 = vld [vmem:[%s3432_s17] ss:$0 sm:$0xff] }
 0x8c1   :  { %809 = vadd.xlane.f32.xlu1 %v808_v40  ;;  %v805_v41 = vsel %vm244_vm6, %v801_v39, 0.0 }
 0x8c2   :  { %806 = vadd.xlane.f32.xlu0 %v805_v41  ;;  %2558 = vmatprep.subr.bf16.mxu1 %v2557_v53 }
 0x8c3   :  { %2560 = vmatpush3.bf16.msra.mxu1 %v2557_v53 }
 0x8c4   :  { %2562 = vmatprep.subr.bf16.mxu1 %v2561_v56 }
 0x8c7   :  { %2564 = vmatpush3.bf16.msra.mxu1 %v2561_v56 }
 0x94e   :  { %v810_v42 = vpop.xlane.xlu1 %809 }
 0x94f   :  { %v812_v43 = vmul.f32 0.03125, %v810_v42  ;;  %v807_v44 = vpop.xlane.xlu0 %806 }
 0x950   :  { %v811_v45 = vmul.f32 0.03125, %v807_v44 }
 0x951   :  { %v814_v46 = vsub.f32 %v802_v38, %v812_v43 }
 0x952   :  { %v813_v47 = vsub.f32 %v801_v39, %v811_v45 }
 0x953   :  { %v816_v51 = vmul.f32 %v814_v46, %v814_v46 }
 0x954   :  { %v815_v48 = vmul.f32 %v813_v47, %v813_v47 }
 0x955   :  { %v820_v26 = vsel %vm244_vm6, %v816_v51, 0.0 }
 0x956   :  { %v817_v50 = vsel %vm244_vm6, %v815_v48, 0.0 }
 0x957   :  { %818 = vadd.xlane.f32.xlu0 %v817_v50 }
 0x95b   :  { %821 = vadd.xlane.f32.xlu0 %v820_v26 }
 0x9e4   :  { %v819_v57 = vpop.xlane.xlu0 %818 }
 0x9e5   :  { %v823_v58 = vmul.f32 0.03125, %v819_v57 }
 0x9e7   :  { %v825_v59 = vadd.f32 1e-12, %v823_v58 }
 0x9e8   :  { %v822_v60 = vpop.xlane.xlu0 %821 }
 0x9e9   :  { %2731 = vrsqrt.f32 %v825_v59  ;;  %v824_v61 = vmul.f32 0.03125, %v822_v60 }
 0x9eb   :  { %v826_v62 = vadd.f32 1e-12, %v824_v61 }
 0x9ed   :  { %2733 = vrsqrt.f32 %v826_v62 }
 0x9f3   :  { %v2732_v0 = vpop.eup %2731 }
 0x9f4   :  { %v829_v2 = vmul.f32 %v2732_v0, %v813_v47 }
 0x9f6   :  { %v837_v37 = vmul.f32 %v2103_v1, %v829_v2 }
 0x9f7   :  { %v2734_v35 = vpop.eup %2733 }
 0x9f8   :  { %v830_v4 = vmul.f32 %v2734_v35, %v814_v46  ;;  %v845_v5 = vadd.f32 %v2104_v3, %v837_v37 }
 0x9fa   :  { %v838_v6 = vmul.f32 %v2103_v1, %v830_v4  ;;  %2373 = vmatprep.mubr.msk.f32.mxu1 %vm244_vm6, %v845_v5 }
 0x9fc   :  { %v846_v7 = vadd.f32 %v2104_v3, %v838_v6  ;;  %v2114_v6 = vld [vmem:[%s3461_s26 + $0x28] sm:$0xff] }
 0x9fe   :  { %2374 = vmatmul.mubr.msk.f32.vlgmr.msra.gmra.mrb[10].mxu1 %vm244_vm6, %v846_v7 }
 0xad1   :  { %v2375_v24 = vpop.f32.mrb[10].mxu1 }
 0xad2   :  { %v936_v27 = vadd.f32 %v2375_v24, %v2105_v22  ;;  %v930_v28 = vpop.f32.mrb[11].mxu1 }
 0xad3   :  { %v931_v29 = vadd.f32 %v2105_v22, %v930_v28 }
 0xad4   :  { %v942_v32 = vmul.f32 0.044715, %v936_v27  ;;  %v940_v50 = vmul.f32 0.5, %v936_v27 }
 0xad5   :  { %v941_v33 = vmul.f32 0.044715, %v931_v29  ;;  %v939_v47 = vmul.f32 0.5, %v931_v29 }
 0xad6   :  { %v944_v34 = vmul.f32 %v942_v32, %v936_v27 }
 0xad7   :  { %v943_v36 = vmul.f32 %v941_v33, %v931_v29 }
 0xad8   :  { %v946_v38 = vmul.f32 %v944_v34, %v936_v27  ;;  %v2118_v34 = vld [vmem:[%s3424_s9 + $0x1] ss:$0 sm:$0xff] }
 0xad9   :  { %v945_v39 = vmul.f32 %v943_v36, %v931_v29 }
 0xada   :  { %v948_v40 = vadd.f32 %v946_v38, %v936_v27  ;;  %v2112_v27 = vld [vmem:[%s3475_s27] ss:$0 sm:$0xff] }
 0xadb   :  { %v947_v41 = vadd.f32 %v945_v39, %v931_v29 }
 0xadc   :  { %v950_v42 = vmul.f32 0.7978846, %v948_v40 }
 0xadd   :  { %v949_v43 = vmul.f32 0.7978846, %v947_v41 }
 0xade   :  { %2735 = vtanh.f32 %v950_v42 }
 0xadf   :  { %2737 = vtanh.f32 %v949_v43 }
 0xae8   :  { %v2736_v44 = vpop.eup %2735 }
 0xae9   :  { %v2738_v45 = vpop.eup %2737  ;;  %v954_v46 = vadd.f32 1.0, %v2736_v44 }
 0xaea   :  { %v953_v48 = vadd.f32 1.0, %v2738_v45 }
 0xaeb   :  { %v956_v26 = vmul.f32 %v954_v46, %v940_v50 }
 0xaec   :  { %v955_v51 = vmul.f32 %v953_v48, %v939_v47 }
 0xaee   :  { %2392 = vmatprep.mubr.msk.f32.mxu0 %vm972_vm15, %v955_v51 }
 0xaef   :  { %2393 = vmatmul.mubr.msk.f32.vlgmr.msra.gmra.mrb[4].mxu0 %vm972_vm15, %v956_v26 }
 0xbc2   :  { %v2394_v52 = vpop.f32.mrb[4].mxu0 }
 0xbc3   :  { %v1051_v53 = vadd.f32 %v2394_v52, %v2108_v25  ;;  %v1045_v54 = vpop.f32.mrb[5].mxu0 }
 0xbc4   :  { %v1046_v55 = vadd.f32 %v2108_v25, %v1045_v54 }
 0xbc5   :  { %v1055_v56 = vadd.f32 %v1051_v53, %v846_v7 }
 0xbc6   :  { %v1054_v57 = vadd.f32 %v1046_v55, %v845_v5  ;;  %v2113_v5 = vld [vmem:[%s3461_s26 + $0x20] sm:$0xff] }
 0xbc7   :  { %v1061_v58 = vsel %vm244_vm6, %v1055_v56, 0.0  ;;  %v2581_v7 = vpack.c.bf16 %v2114_v6, %v2113_v5 }
 0xbc8   :  { %1062 = vadd.xlane.f32.xlu0 %v1061_v58  ;;  %v1058_v59 = vsel %vm244_vm6, %v1054_v57, 0.0 }
 0xbc9   :  { %1059 = vadd.xlane.f32.xlu1 %v1058_v59  ;;  %2582 = vmatprep.subr.bf16.mxu1 %v2581_v7 }
 0xbca   :  { %2584 = vmatpush3.bf16.msra.mxu1 %v2581_v7 }
 0xbcb   :  { %2586 = vmatprep.subr.bf16.mxu1 %v2585_v11 }
 0xbce   :  { %2588 = vmatpush3.bf16.msra.mxu1 %v2585_v11 }
 0xc55   :  { %v1063_v60 = vpop.xlane.xlu0 %1062 }
 0xc56   :  { %v1065_v61 = vmul.f32 0.03125, %v1063_v60  ;;  %v1060_v62 = vpop.xlane.xlu1 %1059 }
 0xc57   :  { %v1064_v0 = vmul.f32 0.03125, %v1060_v62 }
 0xc58   :  { %v1067_v1 = vsub.f32 %v1055_v56, %v1065_v61 }
 0xc59   :  { %v1066_v2 = vsub.f32 %v1054_v57, %v1064_v0 }
 0xc5a   :  { %v1069_v3 = vmul.f32 %v1067_v1, %v1067_v1 }
 0xc5b   :  { %v1068_v37 = vmul.f32 %v1066_v2, %v1066_v2 }
 0xc5c   :  { %v1073_v35 = vsel %vm244_vm6, %v1069_v3, 0.0 }
 0xc5d   :  { %1074 = vadd.xlane.f32.xlu0 %v1073_v35  ;;  %v1070_v4 = vsel %vm244_vm6, %v1068_v37, 0.0 }
 0xc5e   :  { %1071 = vadd.xlane.f32.xlu1 %v1070_v4 }
 0xcea   :  { %v1075_v12 = vpop.xlane.xlu0 %1074 }
 0xceb   :  { %v1077_v13 = vmul.f32 0.03125, %v1075_v12  ;;  %v1072_v14 = vpop.xlane.xlu1 %1071 }
 0xcec   :  { %v1076_v15 = vmul.f32 0.03125, %v1072_v14 }
 0xced   :  { %v1079_v16 = vadd.f32 1e-12, %v1077_v13 }
 0xcee   :  { %v1078_v17 = vadd.f32 1e-12, %v1076_v15 }
 0xcef   :  { %2739 = vrsqrt.f32 %v1079_v16 }
 0xcf0   :  { %2741 = vrsqrt.f32 %v1078_v17 }
 0xcf9   :  { %v2740_v18 = vpop.eup %2739 }
 0xcfa   :  { %v2742_v21 = vpop.eup %2741  ;;  %v1083_v22 = vmul.f32 %v2740_v18, %v1067_v1 }
 0xcfb   :  { %v1082_v24 = vmul.f32 %v2742_v21, %v1066_v2 }
 0xcfc   :  { %v1091_v28 = vmul.f32 %v2111_v19, %v1083_v22 }
 0xcfd   :  { %v1090_v29 = vmul.f32 %v2111_v19, %v1082_v24 }
 0xcfe   :  { %v3219_v33 = vadd.f32 %v2112_v27, %v1091_v28 }
 0xcff   :  { %v3217_v32 = vadd.f32 %v2112_v27, %v1090_v29 }
 0xd01   :  { %2403 = vmatprep.mubr.msk.f32.mxu1 %vm244_vm6, %v3217_v32 }
 0xd02   :  { %2404 = vmatmul.mubr.msk.f32.vlgmr.msra.gmra.mrb[12].mxu1 %vm244_vm6, %v3219_v33 }
 0xdd5   :  { %v2405_v36 = vpop.f32.mrb[12].mxu1 }
 0xdd6   :  { %v1191_v38 = vadd.f32 %v2405_v36, %v2118_v34  ;;  %v1185_v39 = vpop.f32.mrb[13].mxu1 }
 0xdd7   :  { %v1186_v40 = vadd.f32 %v2118_v34, %v1185_v39 }
 0xdd8   :  { %1198 = vrot.lane.b32.xlu0 %v1191_v38, %s2799_s5 }
 0xdd9   :  { %1195 = vrot.lane.b32.xlu1 %v1186_v40, %s2799_s5  ;;  %2414 = vmatprep.mubr.msk.f32.mxu1 %vm305_vm7, %v1186_v40 }
 0xe4a   :  { %v1199_v43 = vpop.permute.xlu0 %1198 }
 0xe4b   :  { %v1196_v41 = vpop.permute.xlu1 %1195  ;;  %v3235_v44 = vpack.i.bf16 %v1199_v43, %v1191_v38 }
 0xe4c   :  { %v3231_v42 = vpack.i.bf16 %v1196_v41, %v1186_v40 }
 0xe4e   :  { %2692 = vrot.lane.b32.xlu1 %v3231_v42, %s2800_s28 }
 0xe52   :  { %2697 = vrot.lane.b32.xlu1 %v3235_v44, %s2800_s28 }
 0xec0   :  { %v2693_v45 = vpop.permute.xlu1 %2692 }
 0xec1   :  { %v2695_v46 = vunpack.i.h.bf16 %v2693_v45  ;;  %v2694_v47 = vunpack.i.l.bf16 %v2693_v45 }
 0xec3   :  { %v2589_v48 = vpack.c.bf16 %v2695_v46, %v2694_v47 }
 0xec4   :  { %v2698_v50 = vpop.permute.xlu1 %2697 }
 0xec5   :  { %v2700_v51 = vunpack.i.h.bf16 %v2698_v50  ;;  %v2699_v26 = vunpack.i.l.bf16 %v2698_v50  ;;  %2591 = vmatprep.subr.msk.bf16.mxu1 %vm3052_vm8, %v2589_v48 }
 0xec6   :  { %2594 = vmatpush3.bf16.xpose.msk.msra.mxu1 %vm3052_vm8, %v2589_v48 }
 0xec7   :  { %v2595_v25 = vpack.c.bf16 %v2700_v51, %v2699_v26 }
 0xec9   :  { %2597 = vmatprep.subr.msk.bf16.mxu1 %vm3052_vm8, %v2595_v25 }
 0xece   :  { %2600 = vmatpush3.bf16.xpose.msk.msra.mxu1 %vm3052_vm8, %v2595_v25  ;;  %v2133_v25 = vld [vmem:[%s3425_s10 + $0x20] sm:$0xff] }
 0xed5   :  { %2415 = vmatmul.mubr.msk.f32.vlgmr.msra.gmra.mrb[14].mxu1 %vm305_vm7, %v1196_v41 }
 0xed6   :  { %2417 = vmatprep.mubr.msk.f32.mxu1 %vm305_vm7, %v1191_v38 }
 0xed9   :  { %2418 = vmatmul.mubr.msk.f32.gmra.mrb[16].mxu1 %vm305_vm7, %v1199_v43 }
 0xfa8   :  { %v2416_v52 = vpop.f32.mrb[14].mxu1 }
 0xfa9   :  { %v1310_v53 = vmul.f32 0.25, %v2416_v52  ;;  %v1290_v54 = vpop.f32.mrb[15].mxu1  ;;  %v2134_v52 = vld [vmem:[%s3425_s10 + $0x28] sm:$0xff] }
 0xfaa   :  { %v1309_v55 = vmul.f32 0.25, %v1290_v54  ;;  %v2135_v54 = vld [vmem:[%s3425_s10 + $0x30] sm:$0xff] }
 0xfab   :  { %v1314_v56 = vadd.f32 %v1310_v53, %v3070_v63  ;;  %v2609_v53 = vpack.c.bf16 %v2134_v52, %v2133_v25  ;;  %v2159_v52 = vld [vmem:[%s3431_s16 + $0x70] sm:$0xff] }
 0xfac   :  { %v1313_v57 = vadd.f32 %v1309_v55, %v3070_v63  ;;  %v2419_v58 = vpop.f32.mrb[16].mxu1  ;;  %v2136_v55 = vld [vmem:[%s3425_s10 + $0x38] sm:$0xff] }
 0xfad   :  { %v1312_v59 = vmul.f32 0.25, %v2419_v58  ;;  %v1300_v60 = vpop.f32.mrb[17].mxu1  ;;  %v1318_v49 = vsel %vm3072_vm11, %v1314_v56, -1e+30  ;;  %v2613_v56 = vpack.c.bf16 %v2136_v55, %v2135_v54  ;;  %v2150_v55 = vld [vmem:[%s3430_s15 + $0x1] ss:$0 sm:$0xff] }
 0xfae   :  { %v1311_v61 = vmul.f32 0.25, %v1300_v60  ;;  %v1324_v62 = vsel %vm244_vm6, %v1318_v49, -inf  ;;  %v1317_v0 = vsel %vm3077_vm12, %v1313_v57, -1e+30 }
 0xfaf   :  { %1325 = vmax.xlane.f32.xlu1 %v1324_v62  ;;  %v1321_v1 = vsel %vm244_vm6, %v1317_v0, -inf  ;;  %v1316_v2 = vadd.f32 %v1312_v59, %v3070_v63 }
 0xfb0   :  { %v1315_v3 = vadd.f32 %v1311_v61, %v3070_v63  ;;  %1322 = vmax.xlane.f32.xlu0 %v1321_v1  ;;  %v2138_v1 = vld [vmem:[%s3426_s11 + $0x1] ss:$0 sm:$0xff] }
 0xfb1   :  { %v1320_v35 = vsel %vm3094_vm14, %v1316_v2, -1e+30 }
 0xfb2   :  { %v1319_v37 = vsel %vm3088_vm13, %v1315_v3, -1e+30  ;;  %v1330_v8 = vsel %vm244_vm6, %v1320_v35, -inf }
 0xfb3   :  { %v1327_v30 = vsel %vm244_vm6, %v1319_v37, -inf }
 0xfb4   :  { %1328 = vmax.xlane.f32.xlu0 %v1327_v30 }
 0xfb8   :  { %1331 = vmax.xlane.f32.xlu0 %v1330_v8 }
0x103c   :  { %v1326_v4 = vpop.xlane.xlu1 %1325 }
0x103d   :  { %v1334_v5 = vsub.f32 %v1318_v49, %v1326_v4  ;;  %v1323_v6 = vpop.xlane.xlu0 %1322 }
0x103e   :  { %v1333_v7 = vsub.f32 %v1317_v0, %v1323_v6 }
0x103f   :  { %v1339_v31 = vmul.f32 1.442695, %v1334_v5 }
0x1040   :  { %v1337_v10 = vmul.f32 1.442695, %v1333_v7 }
0x1041   :  { %2743 = vpow2.f32 %v1339_v31  ;;  %v1329_v63 = vpop.xlane.xlu0 %1328 }
0x1042   :  { %2745 = vpow2.f32 %v1337_v10  ;;  %v1335_v20 = vsub.f32 %v1319_v37, %v1329_v63 }
0x1044   :  { %v1341_v11 = vmul.f32 1.442695, %v1335_v20 }
0x1045   :  { %v1332_v12 = vpop.xlane.xlu0 %1331 }
0x1046   :  { %2747 = vpow2.f32 %v1341_v11  ;;  %v1336_v13 = vsub.f32 %v1320_v35, %v1332_v12 }
0x1048   :  { %v1343_v14 = vmul.f32 1.442695, %v1336_v13 }
0x104a   :  { %2749 = vpow2.f32 %v1343_v14  ;;  %v2146_v14 = vld [vmem:[%s3429_s14 + $0x28] sm:$0xff] }
0x104b   :  { %v2744_v23 = vpop.eup %2743 }
0x104c   :  { %v2746_v15 = vpop.eup %2745  ;;  %v1348_v16 = vsel %vm244_vm6, %v2744_v23, 0.0 }
0x104d   :  { %1349 = vadd.xlane.f32.xlu0 %v1348_v16  ;;  %v1345_v17 = vsel %vm244_vm6, %v2746_v15, 0.0  ;;  %v2148_v16 = vld [vmem:[%s3429_s14 + $0x38] sm:$0xff] }
0x104e   :  { %1346 = vadd.xlane.f32.xlu1 %v1345_v17 }
0x1050   :  { %v2748_v18 = vpop.eup %2747 }
0x1051   :  { %v1351_v19 = vsel %vm244_vm6, %v2748_v18, 0.0 }
0x1052   :  { %1352 = vadd.xlane.f32.xlu1 %v1351_v19 }
0x1054   :  { %v2750_v21 = vpop.eup %2749 }
0x1055   :  { %v1354_v22 = vsel %vm244_vm6, %v2750_v21, 0.0 }
0x1056   :  { %1355 = vadd.xlane.f32.xlu0 %v1354_v22 }
0x1063   :  { %2702 = vrot.lane.b32.xlu1 %v3231_v42, %s2804_s7 }
0x106c   :  { %2707 = vrot.lane.b32.xlu0 %v3235_v44, %s2804_s7 }
0x10da   :  { %v1350_v27 = vpop.xlane.xlu0 %1349 }
0x10db   :  { %v1347_v24 = vpop.xlane.xlu1 %1346 }
0x10dc   :  { %2751 = vrcp.f32 %v1347_v24 }
0x10dd   :  { %2753 = vrcp.f32 %v1350_v27 }
0x10df   :  { %v1353_v28 = vpop.xlane.xlu1 %1352 }
0x10e0   :  { %2755 = vrcp.f32 %v1353_v28 }
0x10e3   :  { %v2703_v29 = vpop.permute.xlu1 %2702  ;;  %v1356_v34 = vpop.xlane.xlu0 %1355 }
0x10e4   :  { %v2705_v36 = vunpack.i.h.bf16 %v2703_v29  ;;  %v2704_v38 = vunpack.i.l.bf16 %v2703_v29  ;;  %2757 = vrcp.f32 %v1356_v34  ;;  %v2143_v29 = vld [vmem:[%s3427_s12 + $0x1] ss:$0 sm:$0xff] }
0x10e6   :  { %v2752_v39 = vpop.eup %2751  ;;  %v2601_v40 = vpack.c.bf16 %v2705_v36, %v2704_v38  ;;  %v2144_v36 = vld [vmem:[%s3428_s13 + $0x1] ss:$0 sm:$0xff] }
0x10e7   :  { %v2708_v41 = vpop.permute.xlu0 %2707  ;;  %v1358_v43 = vmul.f32 %v2752_v39, %v2746_v15  ;;  %v2754_v46 = vpop.eup %2753  ;;  %v2147_v15 = vld [vmem:[%s3429_s14 + $0x30] sm:$0xff] }
0x10e8   :  { %v2710_v45 = vunpack.i.h.bf16 %v2708_v41  ;;  %v2709_v42 = vunpack.i.l.bf16 %v2708_v41  ;;  %2602 = vmatprep.subr.bf16.mxu0 %v2601_v40  ;;  %v1360_v48 = vmul.f32 %v2754_v46, %v2744_v23  ;;  %v2621_v17 = vpack.c.bf16 %v2148_v16, %v2147_v15 }
0x10e9   :  { %2604 = vmatpush3.bf16.msra.mxu0 %v2601_v40  ;;  %2428 = vmatprep.mubr.msk.f32.mxu0 %vm244_vm6, %v1358_v43 }
0x10ea   :  { %v2605_v44 = vpack.c.bf16 %v2710_v45, %v2709_v42  ;;  %v2756_v47 = vpop.eup %2755  ;;  %v2153_v42 = vld [vmem:[%s3431_s16 + $0x40] sm:$0xff] }
0x10eb   :  { %v1362_v51 = vmul.f32 %v2756_v47, %v2748_v18  ;;  %v2155_v47 = vld [vmem:[%s3431_s16 + $0x50] sm:$0xff] }
0x10ec   :  { %2606 = vmatprep.subr.bf16.mxu0 %v2605_v44 }
0x10ed   :  { %2608 = vmatpush3.bf16.msra.mxu0 %v2605_v44  ;;  %v2154_v44 = vld [vmem:[%s3431_s16 + $0x48] sm:$0xff] }
0x10ee   :  { %v2758_v50 = vpop.eup %2757  ;;  %2610 = vmatprep.subr.bf16.mxu0 %v2609_v53  ;;  %v2625_v46 = vpack.c.bf16 %v2154_v44, %v2153_v42 }
0x10ef   :  { %v1364_v26 = vmul.f32 %v2758_v50, %v2750_v21  ;;  %v2157_v50 = vld [vmem:[%s3431_s16 + $0x60] sm:$0xff] }
0x10f0   :  { %2429 = vmatmul.mubr.msk.f32.vlgmr.msra.gmra.mrb[6].mxu0 %vm244_vm6, %v1360_v48  ;;  %v2156_v48 = vld [vmem:[%s3431_s16 + $0x58] sm:$0xff] }
0x10f1   :  { %2431 = vmatprep.mubr.msk.f32.mxu0 %vm244_vm6, %v1362_v51  ;;  %2612 = vmatpush3.bf16.msra.mxu0 %v2609_v53  ;;  %v2629_v51 = vpack.c.bf16 %v2156_v48, %v2155_v47  ;;  %v2160_v53 = vld [vmem:[%s3431_s16 + $0x78] sm:$0xff] }
0x10f2   :  { %2614 = vmatprep.subr.bf16.mxu0 %v2613_v56  ;;  %v2637_v54 = vpack.c.bf16 %v2160_v53, %v2159_v52  ;;  %v2168_v52 = vld [vmem:[%s3475_s27 + $0x1] ss:$0 sm:$0xff] }
0x10f4   :  { %2432 = vmatmul.mubr.msk.f32.gmra.mrb[8].mxu0 %vm244_vm6, %v1364_v26  ;;  %v2158_v26 = vld [vmem:[%s3431_s16 + $0x68] sm:$0xff] }
0x10f5   :  { %2616 = vmatpush3.bf16.msra.mxu0 %v2613_v56  ;;  %v2633_v25 = vpack.c.bf16 %v2158_v26, %v2157_v50  ;;  %v2167_v50 = vld [vmem:[%s3433_s18 + $0x1] ss:$0 sm:$0xff] }
0x10f6   :  { %2626 = vmatprep.subr.bf16.mxu0 %v2625_v46 }
0x11c3   :  { %v2430_v57 = vpop.f32.mrb[6].mxu0 }
0x11c4   :  { %1475 = vrot.lane.b32.xlu1 %v2430_v57, %s2802_s0  ;;  %v1455_v58 = vpop.f32.mrb[7].mxu0 }
0x11c7   :  { %v2433_v59 = vpop.f32.mrb[8].mxu0 }
0x11c8   :  { %1480 = vrot.lane.b32.xlu1 %v2433_v59, %s2802_s0  ;;  %v1465_v60 = vpop.f32.mrb[9].mxu0 }
0x1236   :  { %v1476_v49 = vpop.permute.xlu1 %1475 }
0x1237   :  { %v1478_v61 = vsel %vm305_vm7, %v1455_v58, %v1476_v49 }
0x1238   :  { %2442 = vmatprep.mubr.msk.f32.mxu0 %vm244_vm6, %v1478_v61 }
0x123a   :  { %v1481_v62 = vpop.permute.xlu1 %1480 }
0x123b   :  { %v1483_v0 = vsel %vm305_vm7, %v1465_v60, %v1481_v62 }
0x123c   :  { %2443 = vmatmul.mubr.msk.f32.vlgmr.msra.gmra.mrb[10].mxu0 %vm244_vm6, %v1483_v0 }
0x123d   :  { %2628 = vmatpush3.bf16.msra.mxu0 %v2625_v46 }
0x123e   :  { %2630 = vmatprep.subr.bf16.mxu0 %v2629_v51 }
0x1241   :  { %2632 = vmatpush3.bf16.msra.mxu0 %v2629_v51 }
0x1242   :  { %2634 = vmatprep.subr.bf16.mxu0 %v2633_v25 }
0x1245   :  { %2636 = vmatpush3.bf16.msra.mxu0 %v2633_v25 }
0x1246   :  { %2638 = vmatprep.subr.bf16.mxu0 %v2637_v54 }
0x1249   :  { %2640 = vmatpush3.bf16.msra.mxu0 %v2637_v54 }
0x130f   :  { %v2444_v2 = vpop.f32.mrb[10].mxu0 }
0x1310   :  { %v1575_v3 = vadd.f32 %v2444_v2, %v2138_v1  ;;  %v1569_v37 = vpop.f32.mrb[11].mxu0 }
0x1311   :  { %v1570_v30 = vadd.f32 %v2138_v1, %v1569_v37 }
0x1312   :  { %v1579_v35 = vadd.f32 %v1575_v3, %v3219_v33 }
0x1313   :  { %v1578_v8 = vadd.f32 %v1570_v30, %v3217_v32  ;;  %v2145_v32 = vld [vmem:[%s3429_s14 + $0x20] sm:$0xff] }
0x1314   :  { %v1587_v4 = vsel %vm244_vm6, %v1579_v35, 0.0  ;;  %v2617_v23 = vpack.c.bf16 %v2146_v14, %v2145_v32 }
0x1315   :  { %1588 = vadd.xlane.f32.xlu1 %v1587_v4  ;;  %v1584_v5 = vsel %vm244_vm6, %v1578_v8, 0.0 }
0x1316   :  { %1585 = vadd.xlane.f32.xlu0 %v1584_v5  ;;  %2618 = vmatprep.subr.bf16.mxu1 %v2617_v23 }
0x1317   :  { %2620 = vmatpush3.bf16.msra.mxu1 %v2617_v23 }
0x1318   :  { %2622 = vmatprep.subr.bf16.mxu1 %v2621_v17 }
0x131b   :  { %2624 = vmatpush3.bf16.msra.mxu1 %v2621_v17 }
0x13a2   :  { %v1589_v6 = vpop.xlane.xlu1 %1588 }
0x13a3   :  { %v1591_v7 = vmul.f32 0.03125, %v1589_v6  ;;  %v1586_v31 = vpop.xlane.xlu0 %1585 }
0x13a4   :  { %v1590_v10 = vmul.f32 0.03125, %v1586_v31 }
0x13a5   :  { %v1593_v63 = vsub.f32 %v1579_v35, %v1591_v7 }
0x13a6   :  { %v1592_v20 = vsub.f32 %v1578_v8, %v1590_v10 }
0x13a7   :  { %v1595_v13 = vmul.f32 %v1593_v63, %v1593_v63 }
0x13a8   :  { %v1594_v11 = vmul.f32 %v1592_v20, %v1592_v20 }
0x13a9   :  { %v1599_v33 = vsel %vm244_vm6, %v1595_v13, 0.0 }
0x13aa   :  { %v1596_v12 = vsel %vm244_vm6, %v1594_v11, 0.0 }
0x13ab   :  { %1597 = vadd.xlane.f32.xlu0 %v1596_v12 }
0x13af   :  { %1600 = vadd.xlane.f32.xlu0 %v1599_v33 }
0x1438   :  { %v1598_v18 = vpop.xlane.xlu0 %1597 }
0x1439   :  { %v1602_v19 = vmul.f32 0.03125, %v1598_v18 }
0x143b   :  { %v1604_v21 = vadd.f32 1e-12, %v1602_v19 }
0x143c   :  { %v1601_v22 = vpop.xlane.xlu0 %1600 }
0x143d   :  { %2759 = vrsqrt.f32 %v1604_v21  ;;  %v1603_v24 = vmul.f32 0.03125, %v1601_v22 }
0x143f   :  { %v1605_v27 = vadd.f32 1e-12, %v1603_v24 }
0x1441   :  { %2761 = vrsqrt.f32 %v1605_v27 }
0x1447   :  { %v2760_v28 = vpop.eup %2759 }
0x1448   :  { %v1608_v34 = vmul.f32 %v2760_v28, %v1592_v20 }
0x144a   :  { %v1616_v38 = vmul.f32 %v2143_v29, %v1608_v34  ;;  %v1890_v34 = vld [vmem:[%s3435_s20 + $0x8] sm:$0xff] }
0x144b   :  { %v2762_v39 = vpop.eup %2761 }
0x144c   :  { %v1609_v40 = vmul.f32 %v2762_v39, %v1593_v63  ;;  %v1624_v41 = vadd.f32 %v2144_v36, %v1616_v38  ;;  %v2162_v63 = vld [vmem:[%s3432_s17 + $0x1] ss:$0 sm:$0xff]  ;;  %v2805_v38 = vmov 0.0|0.0   ;;  %v1891_v39 = vld [vmem:[%s3435_s20 + $0x10] sm:$0xff] }
0x144d   :  { %2641 = vmatprep.subr.bf16.mxu1 %v2805_v38 }
0x144e   :  { %v1617_v43 = vmul.f32 %v2143_v29, %v1609_v40  ;;  %2453 = vmatprep.mubr.msk.f32.mxu1 %vm244_vm6, %v1624_v41  ;;  %v1889_v29 = vld [vmem:[%s3435_s20] sm:$0xff]  ;;  %v1892_v40 = vld [vmem:[%s3435_s20 + $0x18] sm:$0xff] }
0x1450   :  { %v1625_v45 = vadd.f32 %v2144_v36, %v1617_v43  ;;  %v2642_v36 = vpack.c.bf16 %v1890_v34, %v1889_v29 }
0x1452   :  { %2454 = vmatmul.mubr.msk.f32.vlgmr.msra.gmra.mrb[18].mxu1 %vm244_vm6, %v1625_v45 }
0x1453   :  { %2643 = vmatpush3.bf16.msra.mxu1 %v2642_v36  ;;  %2483 = vmatprep.mubr.msk.f32.mxu1 %vm2806_vm0, %v2798_v9 }
0x1454   :  { %2644 = vmatprep.subr.bf16.mxu1 %v2805_v38 }
0x1525   :  { %v2455_v56 = vpop.f32.mrb[18].mxu1 }
0x1526   :  { %v1717_v57 = vadd.f32 %v2455_v56, %v2150_v55  ;;  %v1711_v58 = vpop.f32.mrb[19].mxu1 }
0x1527   :  { %v1712_v59 = vadd.f32 %v2150_v55, %v1711_v58 }
0x1528   :  { %v1723_v60 = vmul.f32 0.044715, %v1717_v57  ;;  %v1721_v7 = vmul.f32 0.5, %v1717_v57 }
0x1529   :  { %v1722_v49 = vmul.f32 0.044715, %v1712_v59  ;;  %v1720_v5 = vmul.f32 0.5, %v1712_v59 }
0x152a   :  { %v1725_v61 = vmul.f32 %v1723_v60, %v1717_v57  ;;  %v1975_v60 = vld [vmem:[%s3437_s22 + $0x8] sm:$0xff] }
0x152b   :  { %v1724_v62 = vmul.f32 %v1722_v49, %v1712_v59  ;;  %v1976_v49 = vld [vmem:[%s3437_s22 + $0x10] sm:$0xff] }
0x152c   :  { %v1727_v0 = vmul.f32 %v1725_v61, %v1717_v57 }
0x152d   :  { %v1726_v1 = vmul.f32 %v1724_v62, %v1712_v59  ;;  %v1977_v62 = vld [vmem:[%s3437_s22 + $0x18] sm:$0xff] }
0x152e   :  { %v1729_v2 = vadd.f32 %v1727_v0, %v1717_v57  ;;  %v2651_v0 = vpack.c.bf16 %v1977_v62, %v1976_v49 }
0x152f   :  { %v1728_v3 = vadd.f32 %v1726_v1, %v1712_v59  ;;  %v1974_v59 = vld [vmem:[%s3437_s22] sm:$0xff]  ;;  %s2807_s22 = smov [#allocation2]  }
0x1530   :  { %v1731_v37 = vmul.f32 0.7978846, %v1729_v2  ;;  %v2648_v61 = vpack.c.bf16 %v1975_v60, %v1974_v59  ;;  %s2066_s9 = sshll.u32 %s2807_s22, 4  ;;  %s2067_s9 = int_to_ptr.vmem [resolvable:$true] %s2066_s9 }
0x1531   :  { %v1730_v30 = vmul.f32 0.7978846, %v1728_v3  ;;  %p2778_p1 = scmp.lt.s32.totalorder %s2067_s9, %s2067_s9 }
0x1532   :  { %2763 = vtanh.f32 %v1731_v37 }
0x1533   :  { %2765 = vtanh.f32 %v1730_v30  ;;  %v2171_v30 = vld [vmem:[%s3438_s23] ss:$0 sm:$0xff] }
0x153c   :  { %v2764_v35 = vpop.eup %2763 }
0x153d   :  { %v2766_v8 = vpop.eup %2765  ;;  %v1735_v4 = vadd.f32 1.0, %v2764_v35 }
0x153e   :  { %v1734_v6 = vadd.f32 1.0, %v2766_v8 }
0x153f   :  { %v1737_v10 = vmul.f32 %v1735_v4, %v1721_v7 }
0x1540   :  { %v1736_v31 = vmul.f32 %v1734_v6, %v1720_v5 }
0x1542   :  { %2472 = vmatprep.mubr.msk.f32.mxu0 %vm972_vm15, %v1736_v31 }
0x1543   :  { %2473 = vmatmul.mubr.msk.f32.vlgmr.msra.gmra.mrb[12].mxu0 %vm972_vm15, %v1737_v10 }
0x1616   :  { %v2474_v20 = vpop.f32.mrb[12].mxu0 }
0x1617   :  { %v1833_v11 = vadd.f32 %v2474_v20, %v2162_v63  ;;  %v1827_v12 = vpop.f32.mrb[13].mxu0 }
0x1618   :  { %v1828_v13 = vadd.f32 %v2162_v63, %v1827_v12 }
0x1619   :  { %v1837_v33 = vadd.f32 %v1833_v11, %v1625_v45 }
0x161a   :  { %v1836_v32 = vadd.f32 %v1828_v13, %v1624_v41  ;;  %v2645_v41 = vpack.c.bf16 %v1892_v40, %v1891_v39 }
0x161b   :  { %v1845_v14 = vsel %vm244_vm6, %v1837_v33, 0.0 }
0x161c   :  { %1846 = vadd.xlane.f32.xlu1 %v1845_v14  ;;  %v1842_v23 = vsel %vm244_vm6, %v1836_v32, 0.0  ;;  %2646 = vmatpush3.bf16.msra.mxu1 %v2645_v41 }
0x161d   :  { %1843 = vadd.xlane.f32.xlu0 %v1842_v23  ;;  %2647 = vmatprep.subr.bf16.mxu1 %v2805_v38 }
0x16a9   :  { %v1847_v15 = vpop.xlane.xlu1 %1846 }
0x16aa   :  { %v1849_v16 = vmul.f32 0.03125, %v1847_v15  ;;  %v1844_v17 = vpop.xlane.xlu0 %1843 }
0x16ab   :  { %v1848_v18 = vmul.f32 0.03125, %v1844_v17 }
0x16ac   :  { %v1851_v19 = vsub.f32 %v1837_v33, %v1849_v16 }
0x16ad   :  { %v1850_v21 = vsub.f32 %v1836_v32, %v1848_v18 }
0x16ae   :  { %v1853_v22 = vmul.f32 %v1851_v19, %v1851_v19 }
0x16af   :  { %v1852_v24 = vmul.f32 %v1850_v21, %v1850_v21 }
0x16b0   :  { %v1857_v27 = vsel %vm244_vm6, %v1853_v22, 0.0 }
0x16b1   :  { %1858 = vadd.xlane.f32.xlu1 %v1857_v27  ;;  %v1854_v28 = vsel %vm244_vm6, %v1852_v24, 0.0 }
0x16b2   :  { %1855 = vadd.xlane.f32.xlu0 %v1854_v28 }
0x173e   :  { %v1859_v43 = vpop.xlane.xlu1 %1858 }
0x173f   :  { %v1861_v45 = vmul.f32 0.03125, %v1859_v43  ;;  %v1856_v42 = vpop.xlane.xlu0 %1855 }
0x1740   :  { %v1860_v44 = vmul.f32 0.03125, %v1856_v42 }
0x1741   :  { %v1863_v46 = vadd.f32 1e-12, %v1861_v45 }
0x1742   :  { %v1862_v47 = vadd.f32 1e-12, %v1860_v44 }
0x1743   :  { %2767 = vrsqrt.f32 %v1863_v46 }
0x1744   :  { %2769 = vrsqrt.f32 %v1862_v47 }
0x174d   :  { %v2768_v48 = vpop.eup %2767 }
0x174e   :  { %v2770_v51 = vpop.eup %2769  ;;  %v1867_v26 = vmul.f32 %v2768_v48, %v1851_v19 }
0x174f   :  { %v1866_v25 = vmul.f32 %v2770_v51, %v1850_v21 }
0x1750   :  { %v1875_v53 = vmul.f32 %v2167_v50, %v1867_v26 }
0x1751   :  { %v1874_v54 = vmul.f32 %v2167_v50, %v1866_v25 }
0x1752   :  { %v1883_v55 = vadd.f32 %v2168_v52, %v1875_v53 }
0x1753   :  { %v1882_v56 = vadd.f32 %v2168_v52, %v1874_v54 }
0x1754   :  { %v1885_v57 = vrot.slane %v1883_v55, 7 }
0x1756   :  { %v1888_v58 = vsel %vm1887_vm1, %v1882_v56, %v1885_v57 }
0x1757   :  { %2484 = vmatmul.mubr.msk.f32.vlgmr.msra.gmra.mrb[20].mxu1 %vm244_vm6, %v1888_v58 }
0x1758   :  { %2494 = vmatprep.mubr.msk.f32.mxu1 %vm2806_vm0, %v2798_v9  ;;  %2649 = vmatpush3.bf16.msra.mxu1 %v2648_v61  ;;  %v2169_v9 = vld [vmem:[%s3436_s21] ss:$0 sm:$0xff]  ;;  %s2773_s21 = scalar_lea.vmem %s2067_s9, 32 }
0x1759   :  { %2650 = vmatprep.subr.bf16.mxu1 %v2805_v38  ;;  %p2774_p0 = scmp.ne.s32.totalorder %s2067_s9, %s2773_s21  ;;  %p2779_p2 = scmp.lt.s32.totalorder %s2773_s21, %s2773_s21 }
0x175b   :  { %p2780_p3 = por %p2779_p2, %p2778_p1 }
0x175c   :  { %2652 = vmatpush3.bf16.msra.mxu1 %v2651_v0 }
0x175d   :  { %p2781_p4 = pnand %p2780_p3, %p2774_p0 }
0x182a   :  { %v1969_v1 = vpop.f32.mrb[20].mxu1 }
0x182b   :  { %v1970_v2 = vadd.f32 %v2169_v9, %v1969_v1  ;;  %v2485_v3 = vpop.f32.mrb[21].mxu1 }
0x182d   :  { %2771 = vtanh.f32 %v1970_v2 }
0x1837   :  { %v2772_v37 = vpop.eup %2771 }
0x1838   :  { %2495 = vmatmul.mubr.msk.f32.vlgmr.msra.gmra.mrb[22].mxu1 %vm244_vm6, %v2772_v37 }
0x190b   :  { %v2054_v35 = vpop.f32.mrb[22].mxu1 }
0x190c   :  { %v2055_v8 = vadd.f32 %v2171_v30, %v2054_v35  ;;  %v2496_v4 = vpop.f32.mrb[23].mxu1 }
0x190e   :  { %2059 = vst.msk [vmem:[#allocation2] sm:$0x3] %vm2058_vm2, %v2055_v8 }
0x190f   :  { %2784 = shalt.err (!%p2781_p4)
}
0x1910   :  { %s2785_s17 = scalar_lea.hbm %s3439_s24, 32 }
0x1911   :  { %p2786_p5 = scmp.ne.s32.totalorder %s3439_s24, %s2785_s17  ;;  %p2789_p6 = scmp.lt.u32.totalorder %s2785_s17, %s3439_s24 }
0x1913   :  { %p2791_p7 = pnand %p2789_p6, %p2786_p5 }
0x1915   :  { %2794 = shalt.err (!%p2791_p7)
}
0x1916   :  { %2069 = dma.vmem_to_hbm [thread:$0]  %s2067_s9, 32, %s3439_s24, [#allocation3]  }
0x1917   :  { %2795 = dma.done.wait [#allocation3], 32  }
0x1918   :  { %2796 = vsyncadd [#allocation3], 4294967264 }
0x1919   :  { %2073 = vsyncpa [#allocation3], 1 }

</bundles_post_ra>
